<compile_context>
chip_gen: v6e
topology: v6e:2x2x1
jax: 0.10.0
libtpu: 0.0.40
codegen_flags: <defaults>
</compile_context>

<pallas_src>
import functools
import math

import jax
import jax.numpy as jnp
from jax.experimental import pallas as pl
from jax.experimental.pallas import tpu as pltpu

_BN_EPS = 1e-5
_LANES = 128
# Set to jnp.bfloat16 on v6e/v7x for 2x MXU throughput and half the patch
# footprint (elementwise math stays f32 either way).  Kept f32 by default so
# the kernel matches the f32 reference closely in the self-check below.
_MATMUL_DTYPE = jnp.float32


def _round_up(x, m):
    return ((x + m - 1) // m) * m


def _row_tile(m, target=256):
    """Largest row-chunk <= target that divides m (multiple of 8 if possible)."""
    if m <= target:
        return m
    for t in range(target, 7, -1):
        if m % t == 0 and t % 8 == 0:
            return t
    return m


# ----------------------------------------------------------------------------
# Kernel 1/2: per-image  [bn ->] relu -> pad(1) -> im2col -> 3x3 conv,
#             plus per-image BatchNorm partial sums.
# ----------------------------------------------------------------------------
def _conv_stage_kernel(*refs, apply_bn):
    if apply_bn:
        (scale_ref, shift_ref, x_ref, w_ref, b_ref,
         out_ref, stats_ref, pad_ref, patch_ref) = refs
    else:
        (x_ref, w_ref, b_ref,
         out_ref, stats_ref, pad_ref, patch_ref) = refs

    _, H, W, Cp = x_ref.shape
    M = H * W

    # --- (optional) BN of the previous conv output, then ReLU --------------
    xin = x_ref[0]                                    # (H, W, Cp)
    if apply_bn:
        scale = scale_ref[...].reshape(1, 1, Cp)      # loaded/broadcast once
        shift = shift_ref[...].reshape(1, 1, Cp)
        xin = xin * scale + shift
    act = jnp.maximum(xin, 0.0)

    # --- zero only the 1-pixel halo; interior is fully overwritten below ---
    zrow = jnp.zeros((1, W + 2, Cp), jnp.float32)
    zcol = jnp.zeros((H, 1, Cp), jnp.float32)
    pad_ref[0:1, :, :] = zrow
    pad_ref[H + 1:H + 2, :, :] = zrow
    pad_ref[1:H + 1, 0:1, :] = zcol
    pad_ref[1:H + 1, W + 1:W + 2, :] = zcol
    pad_ref[1:H + 1, 1:W + 1, :] = act

    # --- im2col: build one (M, 9*Cp) patch buffer in VMEM ------------------
    for dh in range(3):
        for dw in range(3):
            tap = dh * 3 + dw
            patch_ref[:, tap * Cp:(tap + 1) * Cp] = (
                pad_ref[dh:dh + H, dw:dw + W, :].reshape(M, Cp))

    # --- single K = 9*Cp matmul, chunked over rows to bound vreg pressure --
    bias_row = b_ref[...]                             # (1, Cp), loaded once
    tm = _row_tile(M, 256)
    ssum = jnp.zeros((1, Cp), jnp.float32)
    ssq = jnp.zeros((1, Cp), jnp.float32)
    for m0 in range(0, M, tm):
        lhs = patch_ref[m0:m0 + tm, :]
        rhs = w_ref[...]
        if _MATMUL_DTYPE != jnp.float32:
            lhs = lhs.astype(_MATMUL_DTYPE)
            rhs = rhs.astype(_MATMUL_DTYPE)
        acc = jnp.dot(lhs, rhs, preferred_element_type=jnp.float32) + bias_row
        out_ref[:, m0:m0 + tm, :] = acc[None, :, :]
        ssum = ssum + jnp.sum(acc, axis=0, keepdims=True)
        ssq = ssq + jnp.sum(acc * acc, axis=0, keepdims=True)

    # per-image BatchNorm partials (finalized across the batch outside)
    stats_ref[:, 0:1, :] = ssum[None, :, :]
    stats_ref[:, 1:2, :] = ssq[None, :, :]


def _conv_stage(x_nhwc, w_flat, b_row, scale_shift=None):
    N, H, W, Cp = x_nhwc.shape
    apply_bn = scale_shift is not None
    kernel = functools.partial(_conv_stage_kernel, apply_bn=apply_bn)

    vec_spec = pl.BlockSpec((1, Cp), lambda n: (0, 0))
    in_specs = []
    args = []
    if apply_bn:
        in_specs += [vec_spec, vec_spec]
        args += [scale_shift[0], scale_shift[1]]
    in_specs += [
        pl.BlockSpec((1, H, W, Cp), lambda n: (n, 0, 0, 0)),
        pl.BlockSpec((9 * Cp, Cp), lambda n: (0, 0)),    # fetched once (const idx)
        vec_spec,
    ]
    args += [x_nhwc, w_flat, b_row]

    conv_out, stats = pl.pallas_call(
        kernel,
        grid=(N,),
        in_specs=in_specs,
        out_specs=(
            pl.BlockSpec((1, H * W, Cp), lambda n: (n, 0, 0)),
            pl.BlockSpec((1, 2, Cp), lambda n: (n, 0, 0)),
        ),
        out_shape=(
            jax.ShapeDtypeStruct((N, H * W, Cp), jnp.float32),
            jax.ShapeDtypeStruct((N, 2, Cp), jnp.float32),
        ),
        scratch_shapes=[
            pltpu.VMEM((H + 2, W + 2, Cp), jnp.float32),   # padded activation
            pltpu.VMEM((H * W, 9 * Cp), jnp.float32),      # im2col patches
        ],
        compiler_params=pltpu.CompilerParams(
            dimension_semantics=("parallel",),
            vmem_limit_bytes=64 * 1024 * 1024),
    )(*args)
    return conv_out, stats


# ----------------------------------------------------------------------------
# Kernel 3: bn2 + residual add, tiled lane-dense over flattened rows.
# ----------------------------------------------------------------------------
def _bn_residual_kernel(scale_ref, shift_ref, h_ref, x_ref, out_ref, *,
                        scaling, bias):
    scale = scale_ref[...]
    shift = shift_ref[...]
    out_ref[...] = (scaling * (h_ref[...] * scale + shift)
                    + x_ref[...] + bias).astype(out_ref.dtype)


# ----------------------------------------------------------------------------
# BN statistics finalize (tiny, plain JAX glue between the Pallas stages).
# ----------------------------------------------------------------------------
def _bn_scale_shift(stats, gamma, beta, count):
    s = jnp.sum(stats[:, 0, :], axis=0, keepdims=True)      # (1, Cp)
    sq = jnp.sum(stats[:, 1, :], axis=0, keepdims=True)     # (1, Cp)
    mean = s / count
    var = jnp.maximum(sq / count - mean * mean, 0.0)         # biased variance
    inv = jax.lax.rsqrt(var + _BN_EPS)
    scale = gamma * inv
    shift = beta - mean * scale
    return scale, shift


# ----------------------------------------------------------------------------
# Wrapper (NCHW in / NCHW out, matching the PyTorch module).
# ----------------------------------------------------------------------------
def resblock_discriminator_fwd(x_nchw, params, *, scaling=1.0, bias=0.0):
    x = jnp.transpose(x_nchw, (0, 2, 3, 1)).astype(jnp.float32)  # NCHW -> NHWC
    N, H, W, C = x.shape
    Cp = _round_up(C, _LANES)
    xp = jnp.pad(x, ((0, 0), (0, 0), (0, 0), (0, Cp - C)))

    def prep_w(w_hwio):      # (3,3,Cin,Cout) -> lane-padded (9*Cp, Cp)
        wp = jnp.pad(w_hwio.astype(jnp.float32),
                     ((0, 0), (0, 0),
                      (0, Cp - w_hwio.shape[2]), (0, Cp - w_hwio.shape[3])))
        return wp.reshape(9 * Cp, Cp)

    def prep_vec(v):         # (1, C) -> (1, Cp)
        return jnp.pad(v.astype(jnp.float32), ((0, 0), (0, Cp - v.shape[1])))

    w1, w2 = prep_w(params["w1"]), prep_w(params["w2"])
    b1, b2 = prep_vec(params["b1"]), prep_vec(params["b2"])
    g1, bt1 = prep_vec(params["g1"]), prep_vec(params["beta1"])
    g2, bt2 = prep_vec(params["g2"]), prep_vec(params["beta2"])

    count = float(N * H * W)

    # stage 1: relu -> conv1 (+ BN1 partials)
    h1, s1 = _conv_stage(xp, w1, b1, scale_shift=None)
    scale1, shift1 = _bn_scale_shift(s1, g1, bt1, count)

    # stage 2: bn1 -> relu -> conv2 (+ BN2 partials)
    h2, s2 = _conv_stage(h1.reshape(N, H, W, Cp), w2, b2,
                         scale_shift=(scale1, shift1))
    scale2, shift2 = _bn_scale_shift(s2, g2, bt2, count)

    # stage 3: bn2 -> scaling * h + x + bias
    M = N * H * W
    tm = _row_tile(M, 256)
    out_flat = pl.pallas_call(
        functools.partial(_bn_residual_kernel,
                          scaling=float(scaling), bias=float(bias)),
        grid=(M // tm,),
        in_specs=[
            pl.BlockSpec((1, Cp), lambda i: (0, 0)),
            pl.BlockSpec((1, Cp), lambda i: (0, 0)),
            pl.BlockSpec((tm, Cp), lambda i: (i, 0)),
            pl.BlockSpec((tm, Cp), lambda i: (i, 0)),
        ],
        out_specs=pl.BlockSpec((tm, Cp), lambda i: (i, 0)),
        out_shape=jax.ShapeDtypeStruct((M, Cp), jnp.float32),
        compiler_params=pltpu.CompilerParams(
            dimension_semantics=("parallel",),
            vmem_limit_bytes=64 * 1024 * 1024),
    )(scale2, shift2, h2.reshape(M, Cp), xp.reshape(M, Cp))

    out = out_flat.reshape(N, H, W, Cp)[..., :C]
    return jnp.transpose(out, (0, 3, 1, 2))                      # NHWC -> NCHW


# ----------------------------------------------------------------------------
# Deterministic parameter init (glue, plain JAX).
# ----------------------------------------------------------------------------
def _xavier_uniform(key, shape, gain=1.0):
    cout, cin, kh, kw = shape
    fan_in, fan_out = cin * kh * kw, cout * kh * kw
    bound = gain * math.sqrt(6.0 / (fan_in + fan_out))
    return jax.random.uniform(key, shape, jnp.float32, -bound, bound)


def _spectral_normalize(w, key, n_power_iterations=1, eps=1e-12):
    # One power iteration from a deterministic u, matching torch spectral_norm's
    # first training-mode forward.
    cout = w.shape[0]
    w_mat = w.reshape(cout, -1)
    u = jax.random.normal(key, (cout,), jnp.float32)
    u = u / jnp.maximum(jnp.linalg.norm(u), eps)
    v = None
    for _ in range(n_power_iterations):
        v = w_mat.T @ u
        v = v / jnp.maximum(jnp.linalg.norm(v), eps)
        u = w_mat @ v
        u = u / jnp.maximum(jnp.linalg.norm(u), eps)
    sigma = u @ (w_mat @ v)
    return w / sigma


def init_params(key, in_channels, out_channels):
    ks = jax.random.split(key, 6)
    w1 = _xavier_uniform(ks[0], (out_channels, in_channels, 3, 3), gain=1.0)
    w2 = _xavier_uniform(ks[1], (out_channels, out_channels, 3, 3), gain=1.0)
    w1 = _spectral_normalize(w1, ks[2])
    w2 = _spectral_normalize(w2, ks[3])
    bb1 = 1.0 / math.sqrt(in_channels * 9)
    bb2 = 1.0 / math.sqrt(out_channels * 9)
    b1 = jax.random.uniform(ks[4], (1, out_channels), jnp.float32, -bb1, bb1)
    b2 = jax.random.uniform(ks[5], (1, out_channels), jnp.float32, -bb2, bb2)
    g = jnp.ones((1, out_channels), jnp.float32)
    bt = jnp.zeros((1, out_channels), jnp.float32)
    return {
        "w1": jnp.transpose(w1, (2, 3, 1, 0)),   # OIHW -> HWIO
        "w2": jnp.transpose(w2, (2, 3, 1, 0)),
        "b1": b1, "b2": b2,
        "g1": g, "beta1": bt, "g2": g, "beta2": bt,
    }


# ----------------------------------------------------------------------------
# Pure-JAX reference (correctness check).
# ----------------------------------------------------------------------------
def reference_fwd(x_nchw, params, scaling=1.0, bias=0.0):
    x = jnp.transpose(x_nchw, (0, 2, 3, 1)).astype(jnp.float32)

    def conv(h, w, b):
        y = jax.lax.conv_general_dilated(
            h, w, window_strides=(1, 1), padding="SAME",
            dimension_numbers=("NHWC", "HWIO", "NHWC"))
        return y + b.reshape(1, 1, 1, -1)

    def bn(h, g, bt):
        mean = jnp.mean(h, axis=(0, 1, 2), keepdims=True)
        var = jnp.mean((h - mean) ** 2, axis=(0, 1, 2), keepdims=True)
        return ((h - mean) * jax.lax.rsqrt(var + _BN_EPS)
                * g.reshape(1, 1, 1, -1) + bt.reshape(1, 1, 1, -1))

    h = jnp.maximum(x, 0.0)
    h = bn(conv(h, params["w1"], params["b1"]), params["g1"], params["beta1"])
    h = jnp.maximum(h, 0.0)
    h = bn(conv(h, params["w2"], params["b2"]), params["g2"], params["beta2"])
    out = scaling * h + x + bias
    return jnp.transpose(out, (0, 3, 1, 2))


if __name__ == "__main__":
    key = jax.random.PRNGKey(0)
    kx, kp = jax.random.split(key)

    # stride=1 residual add requires in_channels == out_channels.
    N, C, H, W = 2, 8, 16, 16
    x = jax.random.normal(kx, (N, C, H, W), jnp.float32)
    params = init_params(kp, C, C)

    out = resblock_discriminator_fwd(x, params, scaling=1.0, bias=0.0)
    out = jax.block_until_ready(out)
    assert out.shape == (N, C, H, W)

    ref = reference_fwd(x, params, scaling=1.0, bias=0.0)
    if not bool(jnp.allclose(out, ref, atol=2e-4, rtol=2e-4)):
        raise AssertionError(
            f"Pallas kernel mismatch, max abs diff = {jnp.max(jnp.abs(out - ref))}")

    print("KERNEL_OK")
</pallas_src>

<mosaic_0001>
module attributes {stable_mosaic.version = 11 : i64} {
  func.func @_conv_stage_kernel(%arg0: i32, %arg1: memref<1x16x16x128xf32, #tpu.memory_space<vmem>>, %arg2: memref<1152x128xf32, #tpu.memory_space<vmem>>, %arg3: memref<1x128xf32, #tpu.memory_space<vmem>>, %arg4: memref<1x256x128xf32, #tpu.memory_space<vmem>>, %arg5: memref<1x2x128xf32, #tpu.memory_space<vmem>>, %arg6: memref<18x18x128xf32, #tpu.memory_space<vmem>>, %arg7: memref<256x1152xf32, #tpu.memory_space<vmem>>) attributes {dimension_semantics = [#tpu.dimension_semantics<parallel>], iteration_bounds = array<i64: 2>, scalar_prefetch = 0 : i64, scratch_operands = 2 : i64, tpu.core_type = #tpu.core_type<tc>, window_params = [{transform_indices = @transform_0, window_bounds = array<i64: 1, 16, 16, 128>}, {pipeline_mode = #tpu.pipeline_mode<synchronous>, transform_indices = @transform_1, window_bounds = array<i64: 1152, 128>}, {pipeline_mode = #tpu.pipeline_mode<synchronous>, transform_indices = @transform_2, window_bounds = array<i64: 1, 128>}, {transform_indices = @transform_3, window_bounds = array<i64: 1, 256, 128>}, {transform_indices = @transform_4, window_bounds = array<i64: 1, 2, 128>}]} {
    %c0 = arith.constant 0 : index
    %c0_0 = arith.constant 0 : index
    %c0_1 = arith.constant 0 : index
    %c0_2 = arith.constant 0 : index
    %0 = vector.load %arg1[%c0, %c0_0, %c0_1, %c0_2] : memref<1x16x16x128xf32, #tpu.memory_space<vmem>>, vector<1x16x16x128xf32>
    %1 = vector.shape_cast %0 : vector<1x16x16x128xf32> to vector<16x16x128xf32>
    %cst = arith.constant 0.000000e+00 : f32
    %2 = vector.broadcast %cst : f32 to vector<16x16x128xf32>
    %3 = arith.maximumf %1, %2 : vector<16x16x128xf32>
    %cst_3 = arith.constant 0.000000e+00 : f32
    %4 = vector.broadcast %cst_3 : f32 to vector<1x18x128xf32>
    %cst_4 = arith.constant 0.000000e+00 : f32
    %5 = vector.broadcast %cst_4 : f32 to vector<16x1x128xf32>
    %c0_5 = arith.constant 0 : index
    %c0_6 = arith.constant 0 : index
    %c0_7 = arith.constant 0 : index
    %6 = vector.load %arg6[%c0_5, %c0_6, %c0_7] : memref<18x18x128xf32, #tpu.memory_space<vmem>>, vector<1x18x128xf32>
    tpu.vector_store %arg6[%c0_5, %c0_6, %c0_7], %4 {strides = array<i32>} : memref<18x18x128xf32, #tpu.memory_space<vmem>>, vector<1x18x128xf32>,
    %c17 = arith.constant 17 : index
    %c0_8 = arith.constant 0 : index
    %c0_9 = arith.constant 0 : index
    %7 = vector.load %arg6[%c17, %c0_8, %c0_9] : memref<18x18x128xf32, #tpu.memory_space<vmem>>, vector<1x18x128xf32>
    tpu.vector_store %arg6[%c17, %c0_8, %c0_9], %4 {strides = array<i32>} : memref<18x18x128xf32, #tpu.memory_space<vmem>>, vector<1x18x128xf32>,
    %c1 = arith.constant 1 : index
    %c0_10 = arith.constant 0 : index
    %c0_11 = arith.constant 0 : index
    %8 = vector.load %arg6[%c1, %c0_10, %c0_11] : memref<18x18x128xf32, #tpu.memory_space<vmem>>, vector<16x1x128xf32>
    tpu.vector_store %arg6[%c1, %c0_10, %c0_11], %5 {strides = array<i32>} : memref<18x18x128xf32, #tpu.memory_space<vmem>>, vector<16x1x128xf32>,
    %c1_12 = arith.constant 1 : index
    %c17_13 = arith.constant 17 : index
    %c0_14 = arith.constant 0 : index
    %9 = vector.load %arg6[%c1_12, %c17_13, %c0_14] : memref<18x18x128xf32, #tpu.memory_space<vmem>>, vector<16x1x128xf32>
    tpu.vector_store %arg6[%c1_12, %c17_13, %c0_14], %5 {strides = array<i32>} : memref<18x18x128xf32, #tpu.memory_space<vmem>>, vector<16x1x128xf32>,
    %c1_15 = arith.constant 1 : index
    %c1_16 = arith.constant 1 : index
    %c0_17 = arith.constant 0 : index
    %10 = vector.load %arg6[%c1_15, %c1_16, %c0_17] : memref<18x18x128xf32, #tpu.memory_space<vmem>>, vector<16x16x128xf32>
    tpu.vector_store %arg6[%c1_15, %c1_16, %c0_17], %3 {strides = array<i32>} : memref<18x18x128xf32, #tpu.memory_space<vmem>>, vector<16x16x128xf32>,
    %c0_18 = arith.constant 0 : index
    %c0_19 = arith.constant 0 : index
    %c0_20 = arith.constant 0 : index
    %11 = vector.load %arg6[%c0_18, %c0_19, %c0_20] : memref<18x18x128xf32, #tpu.memory_space<vmem>>, vector<16x16x128xf32>
    %12 = vector.shape_cast %11 : vector<16x16x128xf32> to vector<256x128xf32>
    %c0_21 = arith.constant 0 : index
    %c0_22 = arith.constant 0 : index
    %13 = vector.load %arg7[%c0_21, %c0_22] : memref<256x1152xf32, #tpu.memory_space<vmem>>, vector<256x128xf32>
    tpu.vector_store %arg7[%c0_21, %c0_22], %12 {strides = array<i32>} : memref<256x1152xf32, #tpu.memory_space<vmem>>, vector<256x128xf32>,
    %c0_23 = arith.constant 0 : index
    %c1_24 = arith.constant 1 : index
    %c0_25 = arith.constant 0 : index
    %14 = vector.load %arg6[%c0_23, %c1_24, %c0_25] : memref<18x18x128xf32, #tpu.memory_space<vmem>>, vector<16x16x128xf32>
    %15 = vector.shape_cast %14 : vector<16x16x128xf32> to vector<256x128xf32>
    %c0_26 = arith.constant 0 : index
    %c128 = arith.constant 128 : index
    %16 = vector.load %arg7[%c0_26, %c128] : memref<256x1152xf32, #tpu.memory_space<vmem>>, vector<256x128xf32>
    tpu.vector_store %arg7[%c0_26, %c128], %15 {strides = array<i32>} : memref<256x1152xf32, #tpu.memory_space<vmem>>, vector<256x128xf32>,
    %c0_27 = arith.constant 0 : index
    %c2 = arith.constant 2 : index
    %c0_28 = arith.constant 0 : index
    %17 = vector.load %arg6[%c0_27, %c2, %c0_28] : memref<18x18x128xf32, #tpu.memory_space<vmem>>, vector<16x16x128xf32>
    %18 = vector.shape_cast %17 : vector<16x16x128xf32> to vector<256x128xf32>
    %c0_29 = arith.constant 0 : index
    %c256 = arith.constant 256 : index
    %19 = vector.load %arg7[%c0_29, %c256] : memref<256x1152xf32, #tpu.memory_space<vmem>>, vector<256x128xf32>
    tpu.vector_store %arg7[%c0_29, %c256], %18 {strides = array<i32>} : memref<256x1152xf32, #tpu.memory_space<vmem>>, vector<256x128xf32>,
    %c1_30 = arith.constant 1 : index
    %c0_31 = arith.constant 0 : index
    %c0_32 = arith.constant 0 : index
    %20 = vector.load %arg6[%c1_30, %c0_31, %c0_32] : memref<18x18x128xf32, #tpu.memory_space<vmem>>, vector<16x16x128xf32>
    %21 = vector.shape_cast %20 : vector<16x16x128xf32> to vector<256x128xf32>
    %c0_33 = arith.constant 0 : index
    %c384 = arith.constant 384 : index
    %22 = vector.load %arg7[%c0_33, %c384] : memref<256x1152xf32, #tpu.memory_space<vmem>>, vector<256x128xf32>
    tpu.vector_store %arg7[%c0_33, %c384], %21 {strides = array<i32>} : memref<256x1152xf32, #tpu.memory_space<vmem>>, vector<256x128xf32>,
    %c1_34 = arith.constant 1 : index
    %c1_35 = arith.constant 1 : index
    %c0_36 = arith.constant 0 : index
    %23 = vector.load %arg6[%c1_34, %c1_35, %c0_36] : memref<18x18x128xf32, #tpu.memory_space<vmem>>, vector<16x16x128xf32>
    %24 = vector.shape_cast %23 : vector<16x16x128xf32> to vector<256x128xf32>
    %c0_37 = arith.constant 0 : index
    %c512 = arith.constant 512 : index
    %25 = vector.load %arg7[%c0_37, %c512] : memref<256x1152xf32, #tpu.memory_space<vmem>>, vector<256x128xf32>
    tpu.vector_store %arg7[%c0_37, %c512], %24 {strides = array<i32>} : memref<256x1152xf32, #tpu.memory_space<vmem>>, vector<256x128xf32>,
    %c1_38 = arith.constant 1 : index
    %c2_39 = arith.constant 2 : index
    %c0_40 = arith.constant 0 : index
    %26 = vector.load %arg6[%c1_38, %c2_39, %c0_40] : memref<18x18x128xf32, #tpu.memory_space<vmem>>, vector<16x16x128xf32>
    %27 = vector.shape_cast %26 : vector<16x16x128xf32> to vector<256x128xf32>
    %c0_41 = arith.constant 0 : index
    %c640 = arith.constant 640 : index
    %28 = vector.load %arg7[%c0_41, %c640] : memref<256x1152xf32, #tpu.memory_space<vmem>>, vector<256x128xf32>
    tpu.vector_store %arg7[%c0_41, %c640], %27 {strides = array<i32>} : memref<256x1152xf32, #tpu.memory_space<vmem>>, vector<256x128xf32>,
    %c2_42 = arith.constant 2 : index
    %c0_43 = arith.constant 0 : index
    %c0_44 = arith.constant 0 : index
    %29 = vector.load %arg6[%c2_42, %c0_43, %c0_44] : memref<18x18x128xf32, #tpu.memory_space<vmem>>, vector<16x16x128xf32>
    %30 = vector.shape_cast %29 : vector<16x16x128xf32> to vector<256x128xf32>
    %c0_45 = arith.constant 0 : index
    %c768 = arith.constant 768 : index
    %31 = vector.load %arg7[%c0_45, %c768] : memref<256x1152xf32, #tpu.memory_space<vmem>>, vector<256x128xf32>
    tpu.vector_store %arg7[%c0_45, %c768], %30 {strides = array<i32>} : memref<256x1152xf32, #tpu.memory_space<vmem>>, vector<256x128xf32>,
    %c2_46 = arith.constant 2 : index
    %c1_47 = arith.constant 1 : index
    %c0_48 = arith.constant 0 : index
    %32 = vector.load %arg6[%c2_46, %c1_47, %c0_48] : memref<18x18x128xf32, #tpu.memory_space<vmem>>, vector<16x16x128xf32>
    %33 = vector.shape_cast %32 : vector<16x16x128xf32> to vector<256x128xf32>
    %c0_49 = arith.constant 0 : index
    %c896 = arith.constant 896 : index
    %34 = vector.load %arg7[%c0_49, %c896] : memref<256x1152xf32, #tpu.memory_space<vmem>>, vector<256x128xf32>
    tpu.vector_store %arg7[%c0_49, %c896], %33 {strides = array<i32>} : memref<256x1152xf32, #tpu.memory_space<vmem>>, vector<256x128xf32>,
    %c2_50 = arith.constant 2 : index
    %c2_51 = arith.constant 2 : index
    %c0_52 = arith.constant 0 : index
    %35 = vector.load %arg6[%c2_50, %c2_51, %c0_52] : memref<18x18x128xf32, #tpu.memory_space<vmem>>, vector<16x16x128xf32>
    %36 = vector.shape_cast %35 : vector<16x16x128xf32> to vector<256x128xf32>
    %c0_53 = arith.constant 0 : index
    %c1024 = arith.constant 1024 : index
    %37 = vector.load %arg7[%c0_53, %c1024] : memref<256x1152xf32, #tpu.memory_space<vmem>>, vector<256x128xf32>
    tpu.vector_store %arg7[%c0_53, %c1024], %36 {strides = array<i32>} : memref<256x1152xf32, #tpu.memory_space<vmem>>, vector<256x128xf32>,
    %c0_54 = arith.constant 0 : index
    %c0_55 = arith.constant 0 : index
    %38 = vector.load %arg3[%c0_54, %c0_55] : memref<1x128xf32, #tpu.memory_space<vmem>>, vector<1x128xf32>
    %cst_56 = arith.constant 0.000000e+00 : f32
    %39 = vector.broadcast %cst_56 : f32 to vector<1x128xf32>
    %cst_57 = arith.constant 0.000000e+00 : f32
    %40 = vector.broadcast %cst_57 : f32 to vector<1x128xf32>
    %c0_58 = arith.constant 0 : index
    %c0_59 = arith.constant 0 : index
    %41 = vector.load %arg7[%c0_58, %c0_59] : memref<256x1152xf32, #tpu.memory_space<vmem>>, vector<256x1152xf32>
    %c0_60 = arith.constant 0 : index
    %c0_61 = arith.constant 0 : index
    %42 = vector.load %arg2[%c0_60, %c0_61] : memref<1152x128xf32, #tpu.memory_space<vmem>>, vector<1152x128xf32>
    %cst_62 = arith.constant dense<0.000000e+00> : vector<256x128xf32>
    %43 = tpu.matmul %41, %42, %cst_62 {dimension_numbers = #tpu.dot_dimension_numbers<[1], [0], [0], [1], [0, 0, 1, 1], [], []>} : vector<256x1152xf32>, vector<1152x128xf32>, vector<256x128xf32> -> vector<256x128xf32>
    %44 = vector.broadcast %38 : vector<1x128xf32> to vector<256x128xf32>
    %45 = arith.addf %43, %44 : vector<256x128xf32>
    %46 = vector.shape_cast %45 : vector<256x128xf32> to vector<1x256x128xf32>
    %c0_63 = arith.constant 0 : index
    %c0_64 = arith.constant 0 : index
    %c0_65 = arith.constant 0 : index
    %47 = vector.load %arg4[%c0_63, %c0_64, %c0_65] : memref<1x256x128xf32, #tpu.memory_space<vmem>>, vector<1x256x128xf32>
    tpu.vector_store %arg4[%c0_63, %c0_64, %c0_65], %46 {strides = array<i32>} : memref<1x256x128xf32, #tpu.memory_space<vmem>>, vector<1x256x128xf32>,
    %cst_66 = arith.constant dense<0.000000e+00> : vector<128xf32>
    %48 = vector.multi_reduction <add>, %45, %cst_66 [0] : vector<256x128xf32> to vector<128xf32>
    %49 = vector.shape_cast %48 : vector<128xf32> to vector<1x128xf32>
    %50 = arith.addf %39, %49 : vector<1x128xf32>
    %51 = arith.mulf %45, %45 : vector<256x128xf32>
    %cst_67 = arith.constant dense<0.000000e+00> : vector<128xf32>
    %52 = vector.multi_reduction <add>, %51, %cst_67 [0] : vector<256x128xf32> to vector<128xf32>
    %53 = vector.shape_cast %52 : vector<128xf32> to vector<1x128xf32>
    %54 = arith.addf %40, %53 : vector<1x128xf32>
    %55 = vector.shape_cast %50 : vector<1x128xf32> to vector<1x1x128xf32>
    %c0_68 = arith.constant 0 : index
    %c0_69 = arith.constant 0 : index
    %c0_70 = arith.constant 0 : index
    %56 = vector.load %arg5[%c0_68, %c0_69, %c0_70] : memref<1x2x128xf32, #tpu.memory_space<vmem>>, vector<1x1x128xf32>
    tpu.vector_store %arg5[%c0_68, %c0_69, %c0_70], %55 {strides = array<i32>} : memref<1x2x128xf32, #tpu.memory_space<vmem>>, vector<1x1x128xf32>,
    %57 = vector.shape_cast %54 : vector<1x128xf32> to vector<1x1x128xf32>
    %c0_71 = arith.constant 0 : index
    %c1_72 = arith.constant 1 : index
    %c0_73 = arith.constant 0 : index
    %58 = vector.load %arg5[%c0_71, %c1_72, %c0_73] : memref<1x2x128xf32, #tpu.memory_space<vmem>>, vector<1x1x128xf32>
    tpu.vector_store %arg5[%c0_71, %c1_72, %c0_73], %57 {strides = array<i32>} : memref<1x2x128xf32, #tpu.memory_space<vmem>>, vector<1x1x128xf32>,
    return
  }
  func.func @transform_0(%arg0: i32) -> (i32, i32, i32, i32) {
    %c0_i32 = arith.constant 0 : i32
    %c0_i32_0 = arith.constant 0 : i32
    %c0_i32_1 = arith.constant 0 : i32
    %c0_i32_2 = arith.constant 0 : i32
    return %arg0, %c0_i32, %c0_i32_0, %c0_i32_1 : i32, i32, i32, i32
  }
  func.func @transform_1(%arg0: i32) -> (i32, i32) {
    %c0_i32 = arith.constant 0 : i32
    %c0_i32_0 = arith.constant 0 : i32
    %c0_i32_1 = arith.constant 0 : i32
    return %c0_i32, %c0_i32_0 : i32, i32
  }
  func.func @transform_2(%arg0: i32) -> (i32, i32) {
    %c0_i32 = arith.constant 0 : i32
    %c0_i32_0 = arith.constant 0 : i32
    %c0_i32_1 = arith.constant 0 : i32
    return %c0_i32, %c0_i32_0 : i32, i32
  }
  func.func @transform_3(%arg0: i32) -> (i32, i32, i32) {
    %c0_i32 = arith.constant 0 : i32
    %c0_i32_0 = arith.constant 0 : i32
    %c0_i32_1 = arith.constant 0 : i32
    return %arg0, %c0_i32, %c0_i32_0 : i32, i32, i32
  }
  func.func @transform_4(%arg0: i32) -> (i32, i32, i32) {
    %c0_i32 = arith.constant 0 : i32
    %c0_i32_0 = arith.constant 0 : i32
    %c0_i32_1 = arith.constant 0 : i32
    return %arg0, %c0_i32, %c0_i32_0 : i32, i32, i32
  }
}

</mosaic_0001>

<bundles_post_ra>
// kernel: tpu_custom_call.1
= control target key start
LH: loop header
LB: loop body
LE: loop exit
PB: predicated region body
PF: predicated region fallthrough
CT: control target
= control target key end

     0   :  { %10 = vsyncpa [#allocation5], 0  ;;  %s4552_s0 = inlined_call_operand.hbm [shape: f32[2,16,16,128], index: 0, kind: input, shape index: {}]   ;;  %s4553_s1 = inlined_call_operand.hbm [shape: f32[1152,128], index: 1, kind: input, shape index: {}]   ;;  %s4554_s2 = inlined_call_operand.vmem [shape: f32[1,128], index: 2, kind: input, shape index: {}]   ;;  %s4555_s3 = inlined_call_operand.hbm [shape: f32[2,256,128], index: 3, kind: output, shape index: {0}]   ;;  %s4556_s4 = inlined_call_operand.hbm [shape: f32[2,2,128], index: 4, kind: output, shape index: {1}]  }
   0x1   :  { %12 = vsyncpa [#allocation5 + $0x1], 0 }
   0x2   :  { %13 = vsyncpa [#allocation8], 0 }
   0x3   :  { %14 = vsyncpa [#allocation6], 0 }
   0x4   :  { %16 = vsyncpa [#allocation6 + $0x1], 0 }
   0x5   :  { %17 = vsyncpa [#allocation11], 0 }
   0x6   :  { %19 = vsyncpa [#allocation11 + $0x1], 0  ;;  %s3275_s15 = smov 0   ;;  %s3277_s16 = smov 0  }
   0x7   :  { %s3279_s17 = smov 0   ;;  %s3281_s18 = smov 0  }
   0x8 LB: > { %s3296_s19 = sadd.s32 4294967295, %s3239_s18   ;;  %s2808_s20 = sadd.s32 4294967294, %s3239_s18   ;;  %s3239_s18 = sphi %s3281_s18, %s4635_s18   ;;  %s3235_s17 = sphi %s3279_s17, %s4634_s17   ;;  %s3231_s16 = sphi %s3277_s16, %s4633_s16   ;;  %s3227_s15 = sphi %s3275_s15, %s4632_s15  }
   0x9   : > { %p45_p0 = scmp.ne.s32.totalorder %s3231_s16, %s3227_s15  ;;  %p4557_p1 = scmp.eq.s32.totalorder %s3296_s19, 0 }
   0xa   : > { %p117_p3 = scmp.eq.s32.totalorder %s2808_s20, 1  ;;  %p2809_p5 = scmp.ge.s32.totalorder %s3239_s18, 1 }
   0xb   : > { %p3305_p4 = por %p4557_p1, %p45_p0  ;;  %p150_p7 = scmp.lt.s32.totalorder %s3239_s18, 3 }
   0xc   : > { %p3310_p6 = por %p117_p3, %p45_p0  ;;  %s3241_s24 = smov [#allocation7]  }
   0xd   : > { %s4577_s21 = scalar_select %p3305_p4, 1, 0 }
   0xe   : > { %s4578_s22 = scalar_select %p3310_p6, 1, 0 }
   0xf   : > { %p3315_p8 = pnand %p2809_p5, %p150_p7  ;;  %s162_s25 = sshll.u32 %s3241_s24, 4  ;;  %s163_s25 = int_to_ptr.vmem [resolvable:$true] %s162_s25 }
  0x10   : > { %s3329_s27 = sadd.s32 1, %s3239_s18   ;;  %s32_s28 = sadd.s32 1, %s3235_s17 }
  0x11   : > { %s4579_s23 = scalar_select %p3315_p8, 1, 0 }
  0x12   : > { %p3000_p9 = pneg %p3315_p8  ;;  %s29_s29 = ssub.s32 %s3239_s18, %s3329_s27 }
  0x13   : > { %s3098_s30 = scalar_lea.vmem %s163_s25, 18432  ;;  %p3106_p5 = scmp.lt.s32.totalorder %s163_s25, %s163_s25 }
  0x14   : > { %p3324_p11 = pnand %p3000_p9, %p4557_p1  ;;  %p3099_p13 = scmp.ne.s32.totalorder %s163_s25, %s3098_s30 }
  0x15   : > { %p3107_p7 = scmp.lt.s32.totalorder %s3098_s30, %s3098_s30 }
  0x16   : > { %p3089_p12 = pneg %p3324_p11 }
  0x17   : > { %p3108_p10 = por %p3107_p7, %p3106_p5 }
  0x18   : > { %p3101_p0 = pnand %p3099_p13, %p3089_p12 }
  0x1a   : > { %p3102_p3 = pneg %p3101_p0 }
  0x1c   : > { %p3109_p2 = pnand %p3108_p10, %p3102_p3 }
  0x1e   : > { %3112 = shalt.err (!%p3109_p2)
}
  0x1f   : > { %s3242_s5 = smov 128   ;;  %s3243_s6 = smov 8  }
  0x20   : > { %3003 = dma.hbm_to_vmem [thread:$0]  (!%p3324_p11), %s4553_s1, 18432, %s163_s25, [#allocation8], %s3242_s5, %s3242_s5, %s3243_s6  }
  0x21   : > { %p30_p2 = scmp.eq.s32.totalorder %s29_s29, 0  ;;  %p39_p9 = scmp.ne.s32.totalorder %s3235_s17, %s3231_s16 }
  0x22   : > { %p40_p10 = scmp.eq.s32.totalorder %s3239_s18, 0  ;;  %p3016_p12 = scmp.lt.s32.totalorder %s3239_s18, 2 }
  0x23   : > { %s3349_s9 = scalar_select %p30_p2, %s3235_s17, %s32_s28  }
  0x24   : > { %p41_p13 = por %p40_p10, %p39_p9  ;;  %p4581_p0 = scmp.eq.s32.totalorder %s3296_s19, 1 }
  0x25   : > { %s179_s11 = sand.u32 1, %s3235_s17   ;;  %s2828_s12 = sshll.u32 %s3239_s18, 12 }
  0x26   : > { %p3353_p3 = por %p4581_p0, %p39_p9  ;;  %s2812_s13 = sshll.u32 %s179_s11, 8 }
  0x27   : > { %s3362_s24 = scalar_lea.hbm %s4552_s0, %s2828_s12  ;;  %s183_s25 = scalar_lea.vmem [#allocation4], %s2812_s13 }
  0x28   : > { %s4582_s10 = scalar_select %p3353_p3, 1, 0 }
  0x29   : > { %s190_s26 = sshll.u32 %s183_s25, 4  ;;  %p3364_p11 = pnand %p3016_p12, %p41_p13  ;;  %s3368_s26 = int_to_ptr.vmem [resolvable:$true] %s190_s26 }
  0x2a   : > { %s3370_s29 = scalar_lea.sflag [#allocation5], %s179_s11  ;;  %s3113_s30 = scalar_lea.hbm %s3362_s24, 4096 }
  0x2b   : > { %p3114_p5 = scmp.ne.s32.totalorder %s3362_s24, %s3113_s30  ;;  %p3115_p7 = pneg %p3364_p11 }
  0x2c   : > { %s3118_s12 = scalar_lea.hbm %s4552_s0, 8192  ;;  %p3119_p10 = scmp.lt.s32.totalorder %s3362_s24, %s4552_s0 }
  0x2d   : > { %p3116_p2 = pnand %p3115_p7, %p3114_p5  ;;  %p3120_p12 = scmp.lt.s32.totalorder %s3118_s12, %s3113_s30 }
  0x2f   : > { %p3117_p9 = pneg %p3116_p2  ;;  %p3121_p13 = por %p3120_p12, %p3119_p10 }
  0x31   : > { %p3122_p0 = pnand %p3121_p13, %p3117_p9 }
  0x33   : > { %3125 = shalt.err (!%p3122_p0)
}
  0x34   : > { %s3126_s11 = scalar_lea.vmem %s3368_s26, 4096  ;;  %s3244_s20 = smov [#allocation4]  }
  0x35   : > { %p3127_p1 = scmp.ne.s32.totalorder %s3368_s26, %s3126_s11  ;;  %s3131_s25 = sshll.u32 %s3244_s20, 4  ;;  %s3132_s25 = int_to_ptr.vmem [resolvable:$false] %s3131_s25 }
  0x36   : > { %s3133_s7 = scalar_lea.vmem %s3132_s25, 8192  ;;  %p3134_p2 = scmp.lt.s32.totalorder %s3368_s26, %s3132_s25 }
  0x37   : > { %p3129_p6 = pnand %p3127_p1, %p3115_p7  ;;  %p3135_p3 = scmp.lt.s32.totalorder %s3133_s7, %s3126_s11 }
  0x39   : > { %p3130_p5 = pneg %p3129_p6  ;;  %p3136_p4 = por %p3135_p3, %p3134_p2 }
  0x3b   : > { %p3137_p8 = pnand %p3136_p4, %p3130_p5 }
  0x3d   : > { %3140 = shalt.err (!%p3137_p8)
}
  0x3e   : > { %3007 = dma.hbm_to_vmem [thread:$0]  (!%p3364_p11), %s3362_s24, 4096, %s3368_s26, %s3370_s29, %s3242_s5, %s3242_s5, %s3243_s6  }
  0x3f   : > { %p4584_p1 = scmp.ne.s32.totalorder %s4579_s23, 0 }
  0x41   : > { %202 = sbr.rel (%p4584_p1) target bundleno = 697 (0x2b9), region = 32 }
  0x46   : > { %s3397_s30 = sand.u32 1, %s3231_s16   ;;  %p4585_p4 = scmp.ne.s32.totalorder %s4577_s21, 0 }
  0x47   : > { %s2816_s8 = sshll.u32 %s3397_s30, 8  ;;  %s205_s12 = scalar_lea.sflag [#allocation5], %s3397_s30 }
  0x48   : > { %s3403_s28 = scalar_lea.vmem [#allocation4], %s2816_s8 }
  0x49   : > { %3210 = dma.done.wait (%p4585_p4), %s205_s12, 4096  }
  0x4a   : > { %3212 = vsyncadd (%p4585_p4), %s205_s12, 4294963200  ;;  %p4586_p6 = scmp.eq.s32.totalorder %s3296_s19, 0 }
  0x4c   : > { %3214 = dma.done.wait (%p4586_p6), [#allocation8], 18432   ;;  %p4587_p8 = pmov %p4586_p6 }
  0x4d   : > { %v3245_v0 = vmov 0.0   ;;  %v1259_v1 = vld [vmem:[#allocation7 + $0x78] sm:$0xff]  ;;  %v1258_v3 = vld [vmem:[#allocation7 + $0x70] sm:$0xff]  ;;  %v1257_v5 = vld [vmem:[#allocation7 + $0x68] sm:$0xff]  ;;  %s4303_s5 = scalar_lea.vmem [#allocation9], %s2816_s8  ;;  %s2829_s6 = sshll.u32 %s3296_s19, 12 }
  0x4e   : > { %3216 = vsyncadd (%p4587_p8), [#allocation8], 4294948864  ;;  %1394 = vmatprep.subr.mxu0 %v3245_v0  ;;  %306 = vst [vmem:[#allocation2] sm:$0xff] %v3245_v0  ;;  %1619 = vmatprep.subr.mxu1 %v3245_v0  ;;  %v1291_v2 = vld [vmem:[#allocation7 + $0x178] sm:$0xff]  ;;  %v1290_v4 = vld [vmem:[#allocation7 + $0x170] sm:$0xff]  ;;  %s2680_s24 = sshll.u32 %s4303_s5, 4  ;;  %s4434_s13 = scalar_lea.hbm %s4555_s3, %s2829_s6  ;;  %s4436_s24 = int_to_ptr.vmem [resolvable:$true] %s2680_s24 }
  0x4f   : > { %307 = vst [vmem:[#allocation2 + $0x8] sm:$0xff] %v3245_v0  ;;  %308 = vst [vmem:[#allocation2 + $0x10] sm:$0x3] %v3245_v0  ;;  %1395 = vmatpush1.msra.mxu0 %v1259_v1  ;;  %1620 = vmatpush1.msra.mxu1 %v1291_v2  ;;  %v1289_v6 = vld [vmem:[#allocation7 + $0x168] sm:$0xff]  ;;  %v1256_v7 = vld [vmem:[#allocation7 + $0x60] sm:$0xff]  ;;  %s2662_s14 = scalar_lea.sflag [#allocation6], %s3397_s30 }
  0x50   : > { %310 = vst [vmem:[#allocation2 + $0x198] sm:$0xff] %v3245_v0  ;;  %311 = vst [vmem:[#allocation2 + $0x1a0] sm:$0xff] %v3245_v0  ;;  %1396 = vmatprep.subr.mxu0 %v3245_v0  ;;  %1621 = vmatprep.subr.mxu1 %v3245_v0  ;;  %v1288_v8 = vld [vmem:[#allocation7 + $0x160] sm:$0xff]  ;;  %v1255_v9 = vld [vmem:[#allocation7 + $0x58] sm:$0xff]  ;;  %s3141_s11 = scalar_lea.vmem %s4436_s24, 4096  ;;  %p4629_p11 = scmp.ne.s32.totalorder %s4582_s10, 0 }
  0x51   : > { %312 = vst [vmem:[#allocation2 + $0x1a8] sm:$0x3] %v3245_v0  ;;  %314 = vst [vmem:[#allocation2 + $0x18] sm:$0x1] %v3245_v0  ;;  %1397 = vmatpush1.msra.mxu0 %v1258_v3  ;;  %1622 = vmatpush1.msra.mxu1 %v1290_v4  ;;  %v1287_v10 = vld [vmem:[#allocation7 + $0x158] sm:$0xff]  ;;  %v1254_v11 = vld [vmem:[#allocation7 + $0x50] sm:$0xff]  ;;  %p3142_p3 = scmp.ne.s32.totalorder %s4436_s24, %s3141_s11 }
  0x52   : > { %315 = vst [vmem:[#allocation2 + $0x30] sm:$0x1] %v3245_v0  ;;  %316 = vst [vmem:[#allocation2 + $0x48] sm:$0x1] %v3245_v0  ;;  %1398 = vmatprep.subr.mxu0 %v3245_v0  ;;  %1623 = vmatprep.subr.mxu1 %v3245_v0  ;;  %v1286_v12 = vld [vmem:[#allocation7 + $0x150] sm:$0xff]  ;;  %v1253_v13 = vld [vmem:[#allocation7 + $0x48] sm:$0xff] }
  0x53   : > { %317 = vst [vmem:[#allocation2 + $0x60] sm:$0x1] %v3245_v0  ;;  %318 = vst [vmem:[#allocation2 + $0x78] sm:$0x1] %v3245_v0  ;;  %1399 = vmatpush1.msra.mxu0 %v1257_v5  ;;  %1624 = vmatpush1.msra.mxu1 %v1289_v6  ;;  %v1285_v14 = vld [vmem:[#allocation7 + $0x148] sm:$0xff]  ;;  %v1252_v15 = vld [vmem:[#allocation7 + $0x40] sm:$0xff]  ;;  %p3143_p7 = pnand %p3142_p3, %p4629_p11 }
  0x54   : > { %319 = vst [vmem:[#allocation2 + $0x90] sm:$0x1] %v3245_v0  ;;  %320 = vst [vmem:[#allocation2 + $0xa8] sm:$0x1] %v3245_v0  ;;  %1400 = vmatprep.subr.mxu0 %v3245_v0  ;;  %1625 = vmatprep.subr.mxu1 %v3245_v0  ;;  %v1284_v16 = vld [vmem:[#allocation7 + $0x140] sm:$0xff]  ;;  %v1251_v17 = vld [vmem:[#allocation7 + $0x38] sm:$0xff] }
  0x55   : > { %321 = vst [vmem:[#allocation2 + $0xc0] sm:$0x1] %v3245_v0  ;;  %322 = vst [vmem:[#allocation2 + $0xd8] sm:$0x1] %v3245_v0  ;;  %1401 = vmatpush1.msra.mxu0 %v1256_v7  ;;  %1626 = vmatpush1.msra.mxu1 %v1288_v8  ;;  %v1283_v18 = vld [vmem:[#allocation7 + $0x138] sm:$0xff]  ;;  %v1250_v19 = vld [vmem:[#allocation7 + $0x30] sm:$0xff]  ;;  %p3144_p9 = pneg %p3143_p7 }
  0x56   : > { %323 = vst [vmem:[#allocation2 + $0xf0] sm:$0x1] %v3245_v0  ;;  %324 = vst [vmem:[#allocation2 + $0x108] sm:$0x1] %v3245_v0  ;;  %1402 = vmatprep.subr.mxu0 %v3245_v0  ;;  %1627 = vmatprep.subr.mxu1 %v3245_v0  ;;  %v1282_v20 = vld [vmem:[#allocation7 + $0x130] sm:$0xff]  ;;  %v1249_v21 = vld [vmem:[#allocation7 + $0x28] sm:$0xff] }
  0x57   : > { %325 = vst [vmem:[#allocation2 + $0x120] sm:$0x1] %v3245_v0  ;;  %326 = vst [vmem:[#allocation2 + $0x138] sm:$0x1] %v3245_v0  ;;  %1403 = vmatpush1.msra.mxu0 %v1255_v9  ;;  %1628 = vmatpush1.msra.mxu1 %v1287_v10  ;;  %v1281_v22 = vld [vmem:[#allocation7 + $0x128] sm:$0xff]  ;;  %v1248_v23 = vld [vmem:[#allocation7 + $0x20] sm:$0xff] }
  0x58   : > { %327 = vst [vmem:[#allocation2 + $0x150] sm:$0x1] %v3245_v0  ;;  %328 = vst [vmem:[#allocation2 + $0x168] sm:$0x1] %v3245_v0  ;;  %1404 = vmatprep.subr.mxu0 %v3245_v0  ;;  %1629 = vmatprep.subr.mxu1 %v3245_v0  ;;  %v1280_v24 = vld [vmem:[#allocation7 + $0x120] sm:$0xff]  ;;  %v1247_v26 = vld [vmem:[#allocation7 + $0x18] sm:$0xff] }
  0x59   : > { %329 = vst [vmem:[#allocation2 + $0x180] sm:$0x1] %v3245_v0  ;;  %330 = vst [vmem:[#allocation2 + $0x29] sm:$0x1] %v3245_v0  ;;  %1405 = vmatpush1.msra.mxu0 %v1254_v11  ;;  %1630 = vmatpush1.msra.mxu1 %v1286_v12  ;;  %v3474_v25 = vld [vmem:[%s3403_s28] sm:$0xff]  ;;  %v1279_v27 = vld [vmem:[#allocation7 + $0x118] sm:$0xff] }
  0x5a   : > { %331 = vst [vmem:[#allocation2 + $0x41] sm:$0x1] %v3245_v0  ;;  %332 = vst [vmem:[#allocation2 + $0x59] sm:$0x1] %v3245_v0  ;;  %1406 = vmatprep.subr.mxu0 %v3245_v0  ;;  %1631 = vmatprep.subr.mxu1 %v3245_v0  ;;  %v274_v28 = vmax.f32 %v3474_v25, 0.0  ;;  %v1246_v29 = vld [vmem:[#allocation7 + $0x10] sm:$0xff] }
  0x5b   : > { %333 = vst [vmem:[#allocation2 + $0x71] sm:$0x1] %v3245_v0  ;;  %334 = vst [vmem:[#allocation2 + $0x89] sm:$0x1] %v3245_v0  ;;  %1407 = vmatpush1.msra.mxu0 %v1253_v13  ;;  %1632 = vmatpush1.msra.mxu1 %v1285_v14  ;;  %v3480_v30 = vld [vmem:[%s3403_s28 + $0x8] sm:$0xff]  ;;  %v1278_v31 = vld [vmem:[#allocation7 + $0x110] sm:$0xff] }
  0x5c   : > { %335 = vst [vmem:[#allocation2 + $0xa1] sm:$0x1] %v3245_v0  ;;  %336 = vst [vmem:[#allocation2 + $0xb9] sm:$0x1] %v3245_v0  ;;  %1408 = vmatprep.subr.mxu0 %v3245_v0  ;;  %1633 = vmatprep.subr.mxu1 %v3245_v0  ;;  %v275_v32 = vmax.f32 %v3480_v30, 0.0  ;;  %v3488_v33 = vld [vmem:[%s3403_s28 + $0x10] sm:$0xff] }
  0x5d   : > { %337 = vst [vmem:[#allocation2 + $0xd1] sm:$0x1] %v3245_v0  ;;  %338 = vst [vmem:[#allocation2 + $0xe9] sm:$0x1] %v3245_v0  ;;  %1409 = vmatpush1.msra.mxu0 %v1252_v15  ;;  %1634 = vmatpush1.msra.mxu1 %v1284_v16  ;;  %v3491_v34 = vld [vmem:[%s3403_s28 + $0x18] sm:$0xff]  ;;  %v1245_v35 = vld [vmem:[#allocation7 + $0x8] sm:$0xff] }
  0x5e   : > { %339 = vst [vmem:[#allocation2 + $0x101] sm:$0x1] %v3245_v0  ;;  %340 = vst [vmem:[#allocation2 + $0x119] sm:$0x1] %v3245_v0  ;;  %1410 = vmatprep.subr.mxu0 %v3245_v0  ;;  %1635 = vmatprep.subr.mxu1 %v3245_v0  ;;  %v276_v36 = vmax.f32 %v3488_v33, 0.0  ;;  %v277_v37 = vmax.f32 %v3491_v34, 0.0 }
  0x5f   : > { %341 = vst [vmem:[#allocation2 + $0x131] sm:$0x1] %v3245_v0  ;;  %342 = vst [vmem:[#allocation2 + $0x149] sm:$0x1] %v3245_v0  ;;  %1411 = vmatpush1.msra.mxu0 %v1251_v17  ;;  %1636 = vmatpush1.msra.mxu1 %v1283_v18  ;;  %v3496_v38 = vld [vmem:[%s3403_s28 + $0x20] sm:$0xff]  ;;  %v1277_v39 = vld [vmem:[#allocation7 + $0x108] sm:$0xff] }
  0x60   : > { %343 = vst [vmem:[#allocation2 + $0x161] sm:$0x1] %v3245_v0  ;;  %344 = vst [vmem:[#allocation2 + $0x179] sm:$0x1] %v3245_v0  ;;  %1412 = vmatprep.subr.mxu0 %v3245_v0  ;;  %1637 = vmatprep.subr.mxu1 %v3245_v0  ;;  %v278_v40 = vmax.f32 %v3496_v38, 0.0  ;;  %v3504_v41 = vld [vmem:[%s3403_s28 + $0x28] sm:$0xff] }
  0x61   : > { %345 = vst [vmem:[#allocation2 + $0x191] sm:$0x1] %v3245_v0  ;;  %1413 = vmatpush1.msra.mxu0 %v1250_v19  ;;  %1638 = vmatpush1.msra.mxu1 %v1282_v20  ;;  %346 = vst [vmem:[#allocation2 + $0x19] sm:$0xff] %v274_v28  ;;  %v3507_v42 = vld [vmem:[%s3403_s28 + $0x30] sm:$0xff]  ;;  %v279_v43 = vmax.f32 %v3504_v41, 0.0  ;;  %v3516_v45 = vld [vmem:[%s3403_s28 + $0x38] sm:$0xff] }
  0x62   : > { %1414 = vmatprep.subr.mxu0 %v3245_v0  ;;  %1639 = vmatprep.subr.mxu1 %v3245_v0  ;;  %347 = vst [vmem:[#allocation2 + $0x21] sm:$0xff] %v275_v32  ;;  %348 = vst [vmem:[#allocation2 + $0x31] sm:$0xff] %v276_v36  ;;  %v280_v44 = vmax.f32 %v3507_v42, 0.0  ;;  %v1244_v46 = vld [vmem:[#allocation7] sm:$0xff]  ;;  %v281_v48 = vmax.f32 %v3516_v45, 0.0  ;;  %v3532_v51 = vld [vmem:[%s3403_s28 + $0x48] sm:$0xff] }
  0x63   : > { %1415 = vmatpush1.msra.mxu0 %v1249_v21  ;;  %1640 = vmatpush1.msra.mxu1 %v1281_v22  ;;  %349 = vst [vmem:[#allocation2 + $0x39] sm:$0xff] %v277_v37  ;;  %v1276_v47 = vld [vmem:[#allocation7 + $0x100] sm:$0xff]  ;;  %350 = vst [vmem:[#allocation2 + $0x49] sm:$0xff] %v278_v40  ;;  %v1275_v52 = vld [vmem:[#allocation7 + $0xf8] sm:$0xff]  ;;  %v283_v54 = vmax.f32 %v3532_v51, 0.0  ;;  %s3246_s20 = smov [#allocation9]  }
  0x64   : > { %1416 = vmatprep.subr.mxu0 %v3245_v0  ;;  %1641 = vmatprep.subr.mxu1 %v3245_v0  ;;  %v3524_v49 = vld [vmem:[%s3403_s28 + $0x40] sm:$0xff]  ;;  %351 = vst [vmem:[#allocation2 + $0x51] sm:$0xff] %v279_v43  ;;  %352 = vst [vmem:[#allocation2 + $0x61] sm:$0xff] %v280_v44  ;;  %v1307_v53 = vld [vmem:[#allocation7 + $0x1f8] sm:$0xff]  ;;  %s3145_s25 = sshll.u32 %s3246_s20, 4  ;;  %s3146_s25 = int_to_ptr.vmem [resolvable:$false] %s3145_s25 }
  0x65   : > { %1417 = vmatpush1.msra.mxu0 %v1248_v23  ;;  %1642 = vmatpush1.msra.mxu1 %v1280_v24  ;;  %v282_v50 = vmax.f32 %v3524_v49, 0.0  ;;  %353 = vst [vmem:[#allocation2 + $0x69] sm:$0xff] %v281_v48  ;;  %v3540_v55 = vld [vmem:[%s3403_s28 + $0x50] sm:$0xff]  ;;  %v3546_v57 = vld [vmem:[%s3403_s28 + $0x58] sm:$0xff]  ;;  %355 = vst [vmem:[#allocation2 + $0x81] sm:$0xff] %v283_v54  ;;  %s3147_s7 = scalar_lea.vmem %s3146_s25, 8192  ;;  %p3148_p10 = scmp.lt.s32.totalorder %s4436_s24, %s3146_s25 }
  0x66   : > { %1418 = vmatprep.subr.mxu0 %v3245_v0  ;;  %1643 = vmatprep.subr.mxu1 %v3245_v0  ;;  %v284_v56 = vmax.f32 %v3540_v55, 0.0  ;;  %v1274_v58 = vld [vmem:[#allocation7 + $0xf0] sm:$0xff]  ;;  %v285_v60 = vmax.f32 %v3546_v57, 0.0  ;;  %v3554_v61 = vld [vmem:[%s3403_s28 + $0x60] sm:$0xff]  ;;  %v1273_v63 = vld [vmem:[#allocation7 + $0xe8] sm:$0xff]  ;;  %p3149_p12 = scmp.lt.s32.totalorder %s3147_s7, %s3141_s11 }
  0x67   : > { %1419 = vmatpush1.msra.mxu0 %v1247_v26  ;;  %1644 = vmatpush1.msra.mxu1 %v1279_v27  ;;  %354 = vst [vmem:[#allocation2 + $0x79] sm:$0xff] %v282_v50  ;;  %v1306_v59 = vld [vmem:[#allocation7 + $0x1f0] sm:$0xff]  ;;  %v286_v62 = vmax.f32 %v3554_v61, 0.0  ;;  %v1305_v1 = vld [vmem:[#allocation7 + $0x1e8] sm:$0xff]  ;;  %v1272_v2 = vld [vmem:[#allocation7 + $0xe0] sm:$0xff] }
  0x68   : > { %1420 = vmatprep.subr.mxu0 %v3245_v0  ;;  %1645 = vmatprep.subr.mxu1 %v3245_v0  ;;  %356 = vst [vmem:[#allocation2 + $0x91] sm:$0xff] %v284_v56  ;;  %357 = vst [vmem:[#allocation2 + $0x99] sm:$0xff] %v285_v60  ;;  %v1304_v3 = vld [vmem:[#allocation7 + $0x1e0] sm:$0xff]  ;;  %v1271_v4 = vld [vmem:[#allocation7 + $0xd8] sm:$0xff]  ;;  %p3150_p13 = por %p3149_p12, %p3148_p10 }
  0x69   : > { %1421 = vmatpush1.msra.mxu0 %v1246_v29  ;;  %1646 = vmatpush1.msra.mxu1 %v1278_v31  ;;  %358 = vst [vmem:[#allocation2 + $0xa9] sm:$0xff] %v286_v62  ;;  %v1303_v5 = vld [vmem:[#allocation7 + $0x1d8] sm:$0xff]  ;;  %v3570_v6 = vld [vmem:[%s3403_s28 + $0x68] sm:$0xff]  ;;  %v1270_v8 = vld [vmem:[#allocation7 + $0xd0] sm:$0xff] }
  0x6a   : > { %1422 = vmatprep.subr.mxu0 %v3245_v0  ;;  %1647 = vmatprep.subr.mxu1 %v3245_v0  ;;  %v287_v7 = vmax.f32 %v3570_v6, 0.0  ;;  %v1302_v9 = vld [vmem:[#allocation7 + $0x1d0] sm:$0xff]  ;;  %v1269_v10 = vld [vmem:[#allocation7 + $0xc8] sm:$0xff]  ;;  %v3584_v14 = vld [vmem:[%s3403_s28 + $0x78] sm:$0xff]  ;;  %p3151_p0 = pnand %p3150_p13, %p3144_p9 }
  0x6b   : > { %1423 = vmatpush1.msra.mxu0 %v1245_v35  ;;  %1648 = vmatpush1.msra.mxu1 %v1277_v39  ;;  %v1301_v11 = vld [vmem:[#allocation7 + $0x1c8] sm:$0xff]  ;;  %v3580_v12 = vld [vmem:[%s3403_s28 + $0x70] sm:$0xff]  ;;  %v1268_v15 = vld [vmem:[#allocation7 + $0xc0] sm:$0xff]  ;;  %v289_v17 = vmax.f32 %v3584_v14, 0.0 }
  0x6c   : > { %1424 = vmatprep.subr.mxu0 %v3245_v0  ;;  %1649 = vmatprep.subr.mxu1 %v3245_v0  ;;  %359 = vst [vmem:[#allocation2 + $0xb1] sm:$0xff] %v287_v7  ;;  %v288_v13 = vmax.f32 %v3580_v12, 0.0  ;;  %v1300_v16 = vld [vmem:[#allocation7 + $0x1c0] sm:$0xff]  ;;  %v3596_v20 = vld [vmem:[%s3403_s28 + $0x88] sm:$0xff]  ;;  %v1267_v21 = vld [vmem:[#allocation7 + $0xb8] sm:$0xff] }
  0x6d   : > { %1425 = vmatpush1.msra.mxu0 %v1244_v46  ;;  %1650 = vmatpush1.msra.mxu1 %v1276_v47  ;;  %v3590_v18 = vld [vmem:[%s3403_s28 + $0x80] sm:$0xff]  ;;  %v1299_v22 = vld [vmem:[#allocation7 + $0x1b8] sm:$0xff]  ;;  %361 = vst [vmem:[#allocation2 + $0xc9] sm:$0xff] %v289_v17  ;;  %v291_v23 = vmax.f32 %v3596_v20, 0.0  ;;  %v3604_v24 = vld [vmem:[%s3403_s28 + $0x90] sm:$0xff] }
  0x6e   : > { %1426 = vmatprep.subr.mxu0 %v3245_v0  ;;  %1651 = vmatprep.subr.mxu1 %v3245_v0  ;;  %360 = vst [vmem:[#allocation2 + $0xc1] sm:$0xff] %v288_v13  ;;  %v290_v19 = vmax.f32 %v3590_v18, 0.0  ;;  %v292_v26 = vmax.f32 %v3604_v24, 0.0  ;;  %v3610_v27 = vld [vmem:[%s3403_s28 + $0x98] sm:$0xff]  ;;  %v1266_v29 = vld [vmem:[#allocation7 + $0xb0] sm:$0xff]  ;;  %v3620_v39 = vld [vmem:[%s3403_s28 + $0xa0] sm:$0xff] }
  0x6f   : > { %1427 = vmatpush2.msra.mxu0 %v1275_v52  ;;  %1652 = vmatpush2.msra.mxu1 %v1307_v53  ;;  %v1298_v31 = vld [vmem:[#allocation7 + $0x1b0] sm:$0xff]  ;;  %363 = vst [vmem:[#allocation2 + $0xe1] sm:$0xff] %v291_v23  ;;  %v4570_v35 = vmax.f32 %v3610_v27, 0.0  ;;  %v1265_v46 = vld [vmem:[#allocation7 + $0xa8] sm:$0xff]  ;;  %v4568_v52 = vmax.f32 %v3620_v39, 0.0  ;;  %v3740_v34 = vld [vmem:[#allocation2 + $0x4a] sm:$0xff] }
  0x70   : > { %1428 = vmatprep.subr.mxu0 %v3245_v0  ;;  %1653 = vmatprep.subr.mxu1 %v3245_v0  ;;  %362 = vst [vmem:[#allocation2 + $0xd9] sm:$0xff] %v290_v19  ;;  %364 = vst [vmem:[#allocation2 + $0xf1] sm:$0xff] %v292_v26  ;;  %v1297_v47 = vld [vmem:[#allocation7 + $0x1a8] sm:$0xff]  ;;  %v3710_v25 = vld [vmem:[#allocation2 + $0x22] sm:$0xff]  ;;  %v4588_v24 = vmax.f32 %v3610_v27, 0.0  ;;  %v4589_v27 = vmax.f32 %v3620_v39, 0.0 }
  0x71   : > { %1429 = vmatpush2.msra.mxu0 %v1274_v58  ;;  %1654 = vmatpush2.msra.mxu1 %v1306_v59  ;;  %365 = vst [vmem:[#allocation2 + $0xf9] sm:$0xff] %v4570_v35  ;;  %v3628_v53 = vld [vmem:[%s3403_s28 + $0xa8] sm:$0xff]  ;;  %v3632_v59 = vld [vmem:[%s3403_s28 + $0xb0] sm:$0xff]  ;;  %366 = vst [vmem:[#allocation2 + $0x109] sm:$0xff] %v4568_v52 }
  0x72   : > { %1430 = vmatprep.subr.mxu0 %v3245_v0  ;;  %1655 = vmatprep.subr.mxu1 %v3245_v0  ;;  %v4567_v58 = vmax.f32 %v3628_v53, 0.0  ;;  %v273_v52 = vld [vmem:[%s3403_s28 + $0xf8] sm:$0xff]  ;;  %v3720_v30 = vld [vmem:[#allocation2 + $0x32] sm:$0xff]  ;;  %v3730_v33 = vld [vmem:[#allocation2 + $0x3a] sm:$0xff]  ;;  %v4590_v39 = vmax.f32 %v3628_v53, 0.0  ;;  %v4591_v53 = vmax.f32 %v3632_v59, 0.0 }
  0x73   : > { %1431 = vmatpush2.msra.mxu0 %v1273_v63  ;;  %1656 = vmatpush2.msra.mxu1 %v1305_v1  ;;  %v1264_v63 = vld [vmem:[#allocation7 + $0xa0] sm:$0xff]  ;;  %v305_v35 = vmax.f32 %v273_v52, 0.0  ;;  %v1319_v52 = vld [vmem:[#allocation7 + $0x258] sm:$0xff]  ;;  %v3784_v45 = vld [vmem:[#allocation2 + $0x7a] sm:$0xff] }
  0x74   : > { %1432 = vmatprep.subr.mxu0 %v3245_v0  ;;  %1657 = vmatprep.subr.mxu1 %v3245_v0  ;;  %v1296_v1 = vld [vmem:[#allocation7 + $0x1a0] sm:$0xff]  ;;  %367 = vst [vmem:[#allocation2 + $0x111] sm:$0xff] %v4567_v58  ;;  %v3762_v41 = vld [vmem:[#allocation2 + $0x62] sm:$0xff]  ;;  %v3817_v55 = vld [vmem:[#allocation2 + $0x9a] sm:$0xff] }
  0x75   : > { %1433 = vmatpush2.msra.mxu0 %v1272_v2  ;;  %1658 = vmatpush2.msra.mxu1 %v1304_v3  ;;  %v4566_v2 = vmax.f32 %v3632_v59, 0.0  ;;  %v3640_v3 = vld [vmem:[%s3403_s28 + $0xb8] sm:$0xff]  ;;  %377 = vst [vmem:[#allocation2 + $0x189] sm:$0xff] %v305_v35  ;;  %v1318_v35 = vld [vmem:[#allocation7 + $0x250] sm:$0xff]  ;;  %v3751_v38 = vld [vmem:[#allocation2 + $0x52] sm:$0xff] }
  0x76   : > { %1434 = vmatprep.subr.mxu0 %v3245_v0  ;;  %1659 = vmatprep.subr.mxu1 %v3245_v0  ;;  %v3773_v42 = vld [vmem:[#allocation2 + $0x6a] sm:$0xff]  ;;  %v3795_v49 = vld [vmem:[#allocation2 + $0x82] sm:$0xff]  ;;  %v3806_v51 = vld [vmem:[#allocation2 + $0x92] sm:$0xff]  ;;  %v4592_v59 = vmax.f32 %v3640_v3, 0.0 }
  0x77   : > { %1435 = vmatpush2.msra.mxu0 %v1271_v4  ;;  %1660 = vmatpush2.msra.mxu1 %v1303_v5  ;;  %v4564_v4 = vmax.f32 %v3640_v3, 0.0  ;;  %v1263_v5 = vld [vmem:[#allocation7 + $0x98] sm:$0xff]  ;;  %368 = vst [vmem:[#allocation2 + $0x121] sm:$0xff] %v4566_v2  ;;  %v3703_v2 = vld [vmem:[#allocation2 + $0x1a] sm:$0xff]  ;;  %v3839_v61 = vld [vmem:[#allocation2 + $0xb2] sm:$0xff] }
  0x78   : > { %1436 = vmatprep.subr.mxu0 %v3245_v0  ;;  %1661 = vmatprep.subr.mxu1 %v3245_v0  ;;  %v3828_v57 = vld [vmem:[#allocation2 + $0xaa] sm:$0xff]  ;;  %v3850_v6 = vld [vmem:[#allocation2 + $0xc2] sm:$0xff]  ;;  %v3874_v14 = vld [vmem:[#allocation2 + $0xda] sm:$0xff] }
  0x79   : > { %1437 = vmatpush2.msra.mxu0 %v1270_v8  ;;  %1662 = vmatpush2.msra.mxu1 %v1302_v9  ;;  %v1295_v8 = vld [vmem:[#allocation7 + $0x198] sm:$0xff]  ;;  %369 = vst [vmem:[#allocation2 + $0x129] sm:$0xff] %v4564_v4  ;;  %v1262_v9 = vld [vmem:[#allocation7 + $0x90] sm:$0xff]  ;;  %v572_v4 = vld [vmem:[#allocation2 + $0x30] sm:$0xff] }
  0x7a   : > { %1438 = vmatprep.subr.mxu0 %v3245_v0  ;;  %1663 = vmatprep.subr.mxu1 %v3245_v0  ;;  %v1338_v12 = vld [vmem:[#allocation7 + $0x2f0] sm:$0xff]  ;;  %v3896_v20 = vld [vmem:[#allocation2 + $0xf2] sm:$0xff] }
  0x7b   : > { %1439 = vmatpush2.msra.mxu0 %v1269_v10  ;;  %1664 = vmatpush2.msra.mxu1 %v1301_v11  ;;  %v1294_v10 = vld [vmem:[#allocation7 + $0x190] sm:$0xff]  ;;  %v3654_v11 = vld [vmem:[%s3403_s28 + $0xc0] sm:$0xff] }
  0x7c   : > { %1440 = vmatprep.subr.mxu0 %v3245_v0  ;;  %1665 = vmatprep.subr.mxu1 %v3245_v0  ;;  %v3885_v18 = vld [vmem:[#allocation2 + $0xe2] sm:$0xff]  ;;  %v4593_v3 = vmax.f32 %v3654_v11, 0.0 }
  0x7d   : > { %1441 = vmatpush2.msra.mxu0 %v1268_v15  ;;  %1666 = vmatpush2.msra.mxu1 %v1300_v16  ;;  %v4562_v15 = vmax.f32 %v3654_v11, 0.0  ;;  %v1261_v16 = vld [vmem:[#allocation7 + $0x88] sm:$0xff] }
  0x7e   : > { %1442 = vmatprep.subr.mxu0 %v3245_v0  ;;  %1667 = vmatprep.subr.mxu1 %v3245_v0 }
  0x7f   : > { %1443 = vmatpush2.msra.mxu0 %v1267_v21  ;;  %1668 = vmatpush2.msra.mxu1 %v1299_v22  ;;  %v1293_v21 = vld [vmem:[#allocation7 + $0x188] sm:$0xff]  ;;  %370 = vst [vmem:[#allocation2 + $0x139] sm:$0xff] %v4562_v15  ;;  %v3683_v15 = vld [vmem:[%s3403_s28 + $0xe0] sm:$0xff] }
  0x80   : > { %1444 = vmatprep.subr.mxu0 %v3245_v0  ;;  %1669 = vmatprep.subr.mxu1 %v3245_v0  ;;  %v3660_v22 = vld [vmem:[%s3403_s28 + $0xc8] sm:$0xff] }
  0x81   : > { %1445 = vmatpush2.msra.mxu0 %v1266_v29  ;;  %1670 = vmatpush2.msra.mxu1 %v1298_v31  ;;  %v4561_v29 = vmax.f32 %v3660_v22, 0.0  ;;  %v1260_v31 = vld [vmem:[#allocation7 + $0x80] sm:$0xff]  ;;  %v4594_v11 = vmax.f32 %v3660_v22, 0.0 }
  0x82   : > { %1446 = vmatprep.subr.mxu0 %v3245_v0  ;;  %1671 = vmatprep.subr.mxu1 %v3245_v0 }
  0x83   : > { %1447 = vmatpush2.msra.mxu0 %v1265_v46  ;;  %1672 = vmatpush2.msra.mxu1 %v1297_v47  ;;  %v442_v46 = vld [vmem:[#allocation2 + $0x1] sm:$0xff]  ;;  %v1292_v47 = vld [vmem:[#allocation7 + $0x180] sm:$0xff]  ;;  %371 = vst [vmem:[#allocation2 + $0x141] sm:$0xff] %v4561_v29 }
  0x84   : > { %1448 = vmatprep.subr.mxu0 %v3245_v0  ;;  %1673 = vmatprep.subr.mxu1 %v3245_v0 }
  0x85   : > { %1449 = vmatpush2.msra.mxu0 %v1264_v63  ;;  %1674 = vmatpush2.msra.mxu1 %v1296_v1  ;;  %v570_v63 = vld [vmem:[#allocation2 + $0x18] sm:$0xff]  ;;  %v3670_v1 = vld [vmem:[%s3403_s28 + $0xd0] sm:$0xff] }
  0x86   : > { %1450 = vmatprep.subr.mxu0 %v3245_v0  ;;  %1675 = vmatprep.subr.mxu1 %v3245_v0  ;;  %v4595_v22 = vmax.f32 %v3670_v1, 0.0 }
  0x87   : > { %1451 = vmatpush2.msra.mxu0 %v1263_v5  ;;  %1676 = vmatpush2.msra.mxu1 %v1295_v8  ;;  %v506_v5 = vld [vmem:[#allocation2 + $0x2] sm:$0xff]  ;;  %v4563_v8 = vmax.f32 %v3670_v1, 0.0 }
  0x88   : > { %1452 = vmatprep.subr.mxu0 %v3245_v0  ;;  %1677 = vmatprep.subr.mxu1 %v3245_v0 }
  0x89   : > { %1453 = vmatpush2.msra.mxu0 %v1262_v9  ;;  %1678 = vmatpush2.msra.mxu1 %v1294_v10  ;;  %v443_v9 = vld [vmem:[#allocation2 + $0x9] sm:$0xff]  ;;  %372 = vst [vmem:[#allocation2 + $0x151] sm:$0xff] %v4563_v8  ;;  %v1322_v8 = vld [vmem:[#allocation7 + $0x270] sm:$0xff] }
  0x8a   : > { %1454 = vmatprep.subr.mxu0 %v3245_v0  ;;  %1679 = vmatprep.subr.mxu1 %v3245_v0  ;;  %v3676_v10 = vld [vmem:[%s3403_s28 + $0xd8] sm:$0xff] }
  0x8b   : > { %1455 = vmatpush2.msra.mxu0 %v1261_v16  ;;  %1680 = vmatpush2.msra.mxu1 %v1293_v21  ;;  %v1323_v16 = vld [vmem:[#allocation7 + $0x278] sm:$0xff]  ;;  %v571_v21 = vld [vmem:[#allocation2 + $0x20] sm:$0xff]  ;;  %v4565_v29 = vmax.f32 %v3676_v10, 0.0  ;;  %v4597_v1 = vmax.f32 %v3676_v10, 0.0  ;;  %v4599_v10 = vmax.f32 %v3683_v15, 0.0 }
  0x8c   : > { %1456 = vmatprep.subr.mxu0 %v3245_v0  ;;  %1681 = vmatprep.subr.mxu1 %v3245_v0 }
  0x8d   : > { %1457 = vmatpush2.msra.mxu0 %v1260_v31  ;;  %1458 = vmatprep.mubr.f32.mxu0 %v442_v46  ;;  %v507_v31 = vld [vmem:[#allocation2 + $0xa] sm:$0xff]  ;;  %373 = vst [vmem:[#allocation2 + $0x159] sm:$0xff] %v4565_v29  ;;  %v4569_v46 = vmax.f32 %v3683_v15, 0.0 }
  0x8e   : > { %1682 = vmatpush2.msra.mxu1 %v1292_v47  ;;  %1683 = vmatprep.mubr.f32.mxu1 %v570_v63  ;;  %v3690_v47 = vld [vmem:[%s3403_s28 + $0xe8] sm:$0xff]  ;;  %v1355_v29 = vld [vmem:[#allocation7 + $0x378] sm:$0xff] }
  0x8f   : > { %1459 = vmatmul.mubr.f32.vlgmr.msra.gmra.mxu0 %v3245_v0  ;;  %1684 = vmatmul.mubr.f32.vlgmr.msra.gmra.mxu1 %v506_v5  ;;  %v4571_v5 = vmax.f32 %v3690_v47, 0.0  ;;  %374 = vst [vmem:[#allocation2 + $0x169] sm:$0xff] %v4569_v46  ;;  %v573_v46 = vld [vmem:[#allocation2 + $0x38] sm:$0xff]  ;;  %v4602_v15 = vmax.f32 %v3690_v47, 0.0 }
  0x90   : > { %1844 = vmatprep.subr.mxu0 %v3245_v0  ;;  %1463 = vmatprep.mubr.f32.mxu0 %v443_v9  ;;  %v1321_v9 = vld [vmem:[#allocation7 + $0x268] sm:$0xff] }
  0x91   : > { %1845 = vmatpush1.msra.mxu0 %v1323_v16  ;;  %1688 = vmatprep.mubr.f32.mxu1 %v571_v21  ;;  %375 = vst [vmem:[#allocation2 + $0x171] sm:$0xff] %v4571_v5  ;;  %v272_v16 = vld [vmem:[%s3403_s28 + $0xf0] sm:$0xff] }
  0x92   : > { %1846 = vmatprep.subr.mxu0 %v3245_v0  ;;  %2069 = vmatprep.subr.mxu1 %v3245_v0  ;;  %v304_v58 = vmax.f32 %v272_v16, 0.0  ;;  %v1349_v16 = vld [vmem:[#allocation7 + $0x348] sm:$0xff] }
  0x93   : > { %1464 = vmatmul.mubr.f32.gmra.mxu0 %v3245_v0  ;;  %1689 = vmatmul.mubr.f32.gmra.mxu1 %v507_v31  ;;  %v1320_v31 = vld [vmem:[#allocation7 + $0x260] sm:$0xff]  ;;  %v634_v47 = vld [vmem:[#allocation2 + $0x19] sm:$0xff] }
  0x94   : > { %1847 = vmatpush1.msra.mxu0 %v1322_v8  ;;  %1468 = vmatprep.mubr.f32.mxu0 %v274_v28  ;;  %376 = vst [vmem:[#allocation2 + $0x181] sm:$0xff] %v304_v58  ;;  %v1354_v8 = vld [vmem:[#allocation7 + $0x370] sm:$0xff]  ;;  %v3713_v28 = vld [vmem:[#allocation2 + $0x48] sm:$0xff]  ;;  %v1353_v58 = vld [vmem:[#allocation7 + $0x368] sm:$0xff] }
  0x95   : > { %1693 = vmatprep.mubr.f32.mxu1 %v572_v4  ;;  %1848 = vmatprep.subr.mxu0 %v3245_v0 }
  0x96   : > { %1849 = vmatpush1.msra.mxu0 %v1321_v9  ;;  %2070 = vmatpush1.msra.mxu1 %v1355_v29  ;;  %v1352_v29 = vld [vmem:[#allocation7 + $0x360] sm:$0xff]  ;;  %v1315_v9 = vld [vmem:[#allocation7 + $0x238] sm:$0xff] }
  0x97   : > { %1469 = vmatmul.mubr.f32.gmra.mxu0 %v570_v63  ;;  %1694 = vmatmul.mubr.f32.gmra.mxu1 %v3703_v2  ;;  %v1351_v63 = vld [vmem:[#allocation7 + $0x358] sm:$0xff] }
  0x98   : > { %1473 = vmatprep.mubr.f32.mxu0 %v275_v32  ;;  %1698 = vmatprep.mubr.f32.mxu1 %v573_v46  ;;  %v3723_v32 = vld [vmem:[#allocation2 + $0x50] sm:$0xff] }
  0x99   : > { %1850 = vmatprep.subr.mxu0 %v3245_v0  ;;  %2071 = vmatprep.subr.mxu1 %v3245_v0 }
  0x9a   : > { %1851 = vmatpush1.msra.mxu0 %v1320_v31  ;;  %2072 = vmatpush1.msra.mxu1 %v1354_v8  ;;  %v1314_v31 = vld [vmem:[#allocation7 + $0x230] sm:$0xff]  ;;  %v1348_v8 = vld [vmem:[#allocation7 + $0x340] sm:$0xff] }
  0x9b   : > { %1474 = vmatmul.mubr.f32.gmra.mxu0 %v571_v21  ;;  %1699 = vmatmul.mubr.f32.gmra.mxu1 %v3710_v25  ;;  %v1316_v21 = vld [vmem:[#allocation7 + $0x240] sm:$0xff]  ;;  %v3999_v5 = vld [vmem:[#allocation2 + $0x180] sm:$0xff] }
  0x9c   : > { %1478 = vmatprep.mubr.f32.mxu0 %v276_v36  ;;  %1703 = vmatprep.mubr.f32.mxu1 %v3713_v28  ;;  %v3733_v36 = vld [vmem:[#allocation2 + $0x60] sm:$0xff]  ;;  %4598 = vst [vmem:[#allocation17_spill] sm:$0xff] %v3999_v5 }
  0x9d   : > { %1852 = vmatprep.subr.mxu0 %v3245_v0  ;;  %2073 = vmatprep.subr.mxu1 %v3245_v0 }
  0x9e   : > { %1853 = vmatpush1.msra.mxu0 %v1319_v52  ;;  %2074 = vmatpush1.msra.mxu1 %v1353_v58  ;;  %v1313_v52 = vld [vmem:[#allocation7 + $0x228] sm:$0xff]  ;;  %v1347_v58 = vld [vmem:[#allocation7 + $0x338] sm:$0xff] }
  0x9f   : > { %1479 = vmatmul.mubr.f32.gmra.mxu0 %v572_v4  ;;  %1704 = vmatmul.mubr.f32.gmra.mxu1 %v3720_v30  ;;  %v1317_v4 = vld [vmem:[#allocation7 + $0x248] sm:$0xff] }
  0xa0   : > { %1483 = vmatprep.mubr.f32.mxu0 %v277_v37  ;;  %1708 = vmatprep.mubr.f32.mxu1 %v3723_v32  ;;  %v3743_v37 = vld [vmem:[#allocation2 + $0x68] sm:$0xff] }
  0xa1   : > { %1854 = vmatprep.subr.mxu0 %v3245_v0  ;;  %2075 = vmatprep.subr.mxu1 %v3245_v0 }
  0xa2   : > { %1855 = vmatpush1.msra.mxu0 %v1318_v35  ;;  %2076 = vmatpush1.msra.mxu1 %v1352_v29  ;;  %v1312_v35 = vld [vmem:[#allocation7 + $0x220] sm:$0xff]  ;;  %v1346_v29 = vld [vmem:[#allocation7 + $0x330] sm:$0xff] }
  0xa3   : > { %1484 = vmatmul.mubr.f32.gmra.mxu0 %v573_v46  ;;  %1709 = vmatmul.mubr.f32.gmra.mxu1 %v3730_v33  ;;  %v1350_v46 = vld [vmem:[#allocation7 + $0x350] sm:$0xff] }
  0xa4   : > { %1488 = vmatprep.mubr.f32.mxu0 %v278_v40  ;;  %1713 = vmatprep.mubr.f32.mxu1 %v3733_v36  ;;  %v3754_v40 = vld [vmem:[#allocation2 + $0x78] sm:$0xff] }
  0xa5   : > { %1856 = vmatprep.subr.mxu0 %v3245_v0  ;;  %2077 = vmatprep.subr.mxu1 %v3245_v0 }
  0xa6   : > { %1857 = vmatpush1.msra.mxu0 %v1317_v4  ;;  %2078 = vmatpush1.msra.mxu1 %v1351_v63  ;;  %v1311_v4 = vld [vmem:[#allocation7 + $0x218] sm:$0xff]  ;;  %v1345_v63 = vld [vmem:[#allocation7 + $0x328] sm:$0xff] }
  0xa7   : > { %1489 = vmatmul.mubr.f32.gmra.mxu0 %v3713_v28  ;;  %1714 = vmatmul.mubr.f32.gmra.mxu1 %v3740_v34 }
  0xa8   : > { %1493 = vmatprep.mubr.f32.mxu0 %v279_v43  ;;  %1718 = vmatprep.mubr.f32.mxu1 %v3743_v37  ;;  %v3765_v43 = vld [vmem:[#allocation2 + $0x80] sm:$0xff] }
  0xa9   : > { %1858 = vmatprep.subr.mxu0 %v3245_v0  ;;  %2079 = vmatprep.subr.mxu1 %v3245_v0 }
  0xaa   : > { %1859 = vmatpush1.msra.mxu0 %v1316_v21  ;;  %2080 = vmatpush1.msra.mxu1 %v1350_v46  ;;  %v1310_v21 = vld [vmem:[#allocation7 + $0x210] sm:$0xff]  ;;  %v1344_v46 = vld [vmem:[#allocation7 + $0x320] sm:$0xff] }
  0xab   : > { %1494 = vmatmul.mubr.f32.gmra.mxu0 %v3723_v32  ;;  %1719 = vmatmul.mubr.f32.gmra.mxu1 %v3751_v38 }
  0xac   : > { %1498 = vmatprep.mubr.f32.mxu0 %v280_v44  ;;  %1723 = vmatprep.mubr.f32.mxu1 %v3754_v40  ;;  %v3776_v44 = vld [vmem:[#allocation2 + $0x90] sm:$0xff] }
  0xad   : > { %1860 = vmatprep.subr.mxu0 %v3245_v0  ;;  %2081 = vmatprep.subr.mxu1 %v3245_v0 }
  0xae   : > { %1861 = vmatpush1.msra.mxu0 %v1315_v9  ;;  %2082 = vmatpush1.msra.mxu1 %v1349_v16  ;;  %v1309_v9 = vld [vmem:[#allocation7 + $0x208] sm:$0xff]  ;;  %v1343_v16 = vld [vmem:[#allocation7 + $0x318] sm:$0xff] }
  0xaf   : > { %1499 = vmatmul.mubr.f32.gmra.mxu0 %v3733_v36  ;;  %1724 = vmatmul.mubr.f32.gmra.mxu1 %v3762_v41 }
  0xb0   : > { %1503 = vmatprep.mubr.f32.mxu0 %v281_v48  ;;  %1728 = vmatprep.mubr.f32.mxu1 %v3765_v43  ;;  %v3787_v48 = vld [vmem:[#allocation2 + $0x98] sm:$0xff] }
  0xb1   : > { %1862 = vmatprep.subr.mxu0 %v3245_v0  ;;  %2083 = vmatprep.subr.mxu1 %v3245_v0 }
  0xb2   : > { %1863 = vmatpush1.msra.mxu0 %v1314_v31  ;;  %2084 = vmatpush1.msra.mxu1 %v1348_v8  ;;  %v1308_v31 = vld [vmem:[#allocation7 + $0x200] sm:$0xff]  ;;  %v1342_v8 = vld [vmem:[#allocation7 + $0x310] sm:$0xff] }
  0xb3   : > { %1504 = vmatmul.mubr.f32.gmra.mxu0 %v3743_v37  ;;  %1729 = vmatmul.mubr.f32.gmra.mxu1 %v3773_v42 }
  0xb4   : > { %1508 = vmatprep.mubr.f32.mxu0 %v282_v50  ;;  %1733 = vmatprep.mubr.f32.mxu1 %v3776_v44  ;;  %v3798_v50 = vld [vmem:[#allocation2 + $0xa8] sm:$0xff] }
  0xb5   : > { %1864 = vmatprep.subr.mxu0 %v3245_v0  ;;  %2085 = vmatprep.subr.mxu1 %v3245_v0 }
  0xb6   : > { %1865 = vmatpush1.msra.mxu0 %v1313_v52  ;;  %2086 = vmatpush1.msra.mxu1 %v1347_v58  ;;  %v1339_v52 = vld [vmem:[#allocation7 + $0x2f8] sm:$0xff]  ;;  %v1341_v58 = vld [vmem:[#allocation7 + $0x308] sm:$0xff] }
  0xb7   : > { %1509 = vmatmul.mubr.f32.gmra.mxu0 %v3754_v40  ;;  %1734 = vmatmul.mubr.f32.gmra.mxu1 %v3784_v45 }
  0xb8   : > { %1513 = vmatprep.mubr.f32.mxu0 %v283_v54  ;;  %1738 = vmatprep.mubr.f32.mxu1 %v3787_v48  ;;  %v3809_v54 = vld [vmem:[#allocation2 + $0xb0] sm:$0xff] }
  0xb9   : > { %1866 = vmatprep.subr.mxu0 %v3245_v0  ;;  %2087 = vmatprep.subr.mxu1 %v3245_v0 }
  0xba   : > { %1867 = vmatpush1.msra.mxu0 %v1312_v35  ;;  %2088 = vmatpush1.msra.mxu1 %v1346_v29  ;;  %v3863_v35 = vld [vmem:[#allocation2 + $0xca] sm:$0xff] }
  0xbb   : > { %1514 = vmatmul.mubr.f32.gmra.mxu0 %v3765_v43  ;;  %1739 = vmatmul.mubr.f32.gmra.mxu1 %v3795_v49  ;;  %v3866_v29 = vld [vmem:[#allocation2 + $0xf0] sm:$0xff] }
  0xbc   : > { %1518 = vmatprep.mubr.f32.mxu0 %v284_v56  ;;  %1743 = vmatprep.mubr.f32.mxu1 %v3798_v50  ;;  %v3820_v56 = vld [vmem:[#allocation2 + $0xc0] sm:$0xff] }
  0xbd   : > { %1868 = vmatprep.subr.mxu0 %v3245_v0  ;;  %2089 = vmatprep.subr.mxu1 %v3245_v0 }
  0xbe   : > { %1869 = vmatpush1.msra.mxu0 %v1311_v4  ;;  %2090 = vmatpush1.msra.mxu1 %v1345_v63  ;;  %v1337_v4 = vld [vmem:[#allocation7 + $0x2e8] sm:$0xff]  ;;  %v1371_v63 = vld [vmem:[#allocation7 + $0x3f8] sm:$0xff] }
  0xbf   : > { %1519 = vmatmul.mubr.f32.gmra.mxu0 %v3776_v44  ;;  %1744 = vmatmul.mubr.f32.gmra.mxu1 %v3806_v51 }
  0xc0   : > { %1523 = vmatprep.mubr.f32.mxu0 %v285_v60  ;;  %1748 = vmatprep.mubr.f32.mxu1 %v3809_v54  ;;  %v3831_v60 = vld [vmem:[#allocation2 + $0xc8] sm:$0xff] }
  0xc1   : > { %1870 = vmatprep.subr.mxu0 %v3245_v0  ;;  %2091 = vmatprep.subr.mxu1 %v3245_v0 }
  0xc2   : > { %1871 = vmatpush1.msra.mxu0 %v1310_v21  ;;  %2092 = vmatpush1.msra.mxu1 %v1344_v46  ;;  %v1336_v21 = vld [vmem:[#allocation7 + $0x2e0] sm:$0xff]  ;;  %v1370_v46 = vld [vmem:[#allocation7 + $0x3f0] sm:$0xff] }
  0xc3   : > { %1524 = vmatmul.mubr.f32.gmra.mxu0 %v3787_v48  ;;  %1749 = vmatmul.mubr.f32.gmra.mxu1 %v3817_v55 }
  0xc4   : > { %1528 = vmatprep.mubr.f32.mxu0 %v286_v62  ;;  %1753 = vmatprep.mubr.f32.mxu1 %v3820_v56  ;;  %v3842_v62 = vld [vmem:[#allocation2 + $0xd8] sm:$0xff] }
  0xc5   : > { %1872 = vmatprep.subr.mxu0 %v3245_v0  ;;  %2093 = vmatprep.subr.mxu1 %v3245_v0 }
  0xc6   : > { %1873 = vmatpush1.msra.mxu0 %v1309_v9  ;;  %2094 = vmatpush1.msra.mxu1 %v1343_v16  ;;  %v1335_v9 = vld [vmem:[#allocation7 + $0x2d8] sm:$0xff]  ;;  %v1369_v16 = vld [vmem:[#allocation7 + $0x3e8] sm:$0xff] }
  0xc7   : > { %1529 = vmatmul.mubr.f32.gmra.mxu0 %v3798_v50  ;;  %1754 = vmatmul.mubr.f32.gmra.mxu1 %v3828_v57 }
  0xc8   : > { %1533 = vmatprep.mubr.f32.mxu0 %v287_v7  ;;  %1758 = vmatprep.mubr.f32.mxu1 %v3831_v60  ;;  %v3852_v7 = vld [vmem:[#allocation2] sm:$0xff] }
  0xc9   : > { %1874 = vmatprep.subr.mxu0 %v3245_v0  ;;  %2095 = vmatprep.subr.mxu1 %v3245_v0  ;;  %v3855_v0 = vld [vmem:[#allocation2 + $0xe0] sm:$0xff] }
  0xca   : > { %1875 = vmatpush1.msra.mxu0 %v1308_v31  ;;  %2096 = vmatpush1.msra.mxu1 %v1342_v8  ;;  %v1334_v31 = vld [vmem:[#allocation7 + $0x2d0] sm:$0xff]  ;;  %v1368_v8 = vld [vmem:[#allocation7 + $0x3e0] sm:$0xff] }
  0xcb   : > { %1534 = vmatmul.mubr.f32.gmra.mxu0 %v3809_v54  ;;  %1759 = vmatmul.mubr.f32.gmra.mxu1 %v3839_v61 }
  0xcc   : > { %1538 = vmatprep.mubr.f32.mxu0 %v288_v13  ;;  %1763 = vmatprep.mubr.f32.mxu1 %v3842_v62  ;;  %v1340_v13 = vld [vmem:[#allocation7 + $0x300] sm:$0xff] }
  0xcd   : > { %1876 = vmatprep.subr.mxu0 %v3852_v7  ;;  %2097 = vmatprep.subr.mxu1 %v3852_v7 }
  0xce   : > { %1877 = vmatpush2.msra.mxu0 %v1339_v52  ;;  %2098 = vmatpush1.msra.mxu1 %v1341_v58  ;;  %v3910_v52 = vld [vmem:[#allocation2 + $0x120] sm:$0xff]  ;;  %v1333_v58 = vld [vmem:[#allocation7 + $0x2c8] sm:$0xff] }
  0xcf   : > { %1539 = vmatmul.mubr.f32.gmra.mxu0 %v3820_v56  ;;  %1764 = vmatmul.mubr.f32.gmra.mxu1 %v3850_v6 }
  0xd0   : > { %1543 = vmatprep.mubr.f32.mxu0 %v289_v17  ;;  %1768 = vmatprep.mubr.f32.mxu1 %v3855_v0  ;;  %v3877_v17 = vld [vmem:[#allocation2 + $0xf8] sm:$0xff] }
  0xd1   : > { %1878 = vmatprep.subr.mxu0 %v3852_v7  ;;  %2099 = vmatprep.subr.mxu1 %v3852_v7 }
  0xd2   : > { %1879 = vmatpush2.msra.mxu0 %v1338_v12  ;;  %2100 = vmatpush1.msra.mxu1 %v1340_v13  ;;  %v1367_v12 = vld [vmem:[#allocation7 + $0x3d8] sm:$0xff] }
  0xd3   : > { %1544 = vmatmul.mubr.f32.gmra.mxu0 %v3831_v60  ;;  %1769 = vmatmul.mubr.f32.gmra.mxu1 %v3863_v35  ;;  %v3918_v13 = vld [vmem:[#allocation2 + $0x10a] sm:$0xff] }
  0xd4   : > { %1548 = vmatprep.mubr.f32.mxu0 %v290_v19  ;;  %1773 = vmatprep.mubr.f32.mxu1 %v3866_v29  ;;  %v3888_v19 = vld [vmem:[#allocation2 + $0x108] sm:$0xff] }
  0xd5   : > { %1880 = vmatprep.subr.mxu0 %v3852_v7  ;;  %2101 = vmatprep.subr.mxu1 %v3852_v7 }
  0xd6   : > { %1881 = vmatpush2.msra.mxu0 %v1337_v4  ;;  %2102 = vmatpush2.msra.mxu1 %v1371_v63  ;;  %v3921_v4 = vld [vmem:[#allocation2 + $0x128] sm:$0xff]  ;;  %v1332_v63 = vld [vmem:[#allocation7 + $0x2c0] sm:$0xff] }
  0xd7   : > { %1549 = vmatmul.mubr.f32.gmra.mxu0 %v3842_v62  ;;  %1774 = vmatmul.mubr.f32.gmra.mxu1 %v3874_v14 }
  0xd8   : > { %1553 = vmatprep.mubr.f32.mxu0 %v291_v23  ;;  %1778 = vmatprep.mubr.f32.mxu1 %v3877_v17  ;;  %v3899_v23 = vld [vmem:[#allocation2 + $0x110] sm:$0xff] }
  0xd9   : > { %1882 = vmatprep.subr.mxu0 %v3852_v7  ;;  %2103 = vmatprep.subr.mxu1 %v3852_v7 }
  0xda   : > { %1883 = vmatpush2.msra.mxu0 %v1336_v21  ;;  %2104 = vmatpush2.msra.mxu1 %v1370_v46  ;;  %v1366_v21 = vld [vmem:[#allocation7 + $0x3d0] sm:$0xff]  ;;  %v3929_v46 = vld [vmem:[#allocation2 + $0x112] sm:$0xff] }
  0xdb   : > { %1554 = vmatmul.mubr.f32.gmra.mxu0 %v3855_v0  ;;  %1779 = vmatmul.mubr.f32.gmra.mxu1 %v3885_v18 }
  0xdc   : > { %1558 = vmatprep.mubr.f32.mxu0 %v292_v26  ;;  %1783 = vmatprep.mubr.f32.mxu1 %v3888_v19  ;;  %v3907_v26 = vld [vmem:[#allocation2 + $0xfa] sm:$0xff] }
  0xdd   : > { %1884 = vmatprep.subr.mxu0 %v3852_v7  ;;  %2105 = vmatprep.subr.mxu1 %v3852_v7 }
  0xde   : > { %1885 = vmatpush2.msra.mxu0 %v1335_v9  ;;  %2106 = vmatpush2.msra.mxu1 %v1369_v16  ;;  %v3932_v9 = vld [vmem:[#allocation2 + $0x138] sm:$0xff]  ;;  %v1331_v16 = vld [vmem:[#allocation7 + $0x2b8] sm:$0xff] }
  0xdf   : > { %1559 = vmatmul.mubr.f32.gmra.mxu0 %v3866_v29  ;;  %1784 = vmatmul.mubr.f32.gmra.mxu1 %v3896_v20 }
  0xe0   : > { %1563 = vmatprep.mubr.f32.mxu0 %v4588_v24  ;;  %1788 = vmatprep.mubr.f32.mxu1 %v3899_v23  ;;  %v3943_v24 = vld [vmem:[#allocation2 + $0x140] sm:$0xff] }
  0xe1   : > { %1886 = vmatprep.subr.mxu0 %v3852_v7  ;;  %2107 = vmatprep.subr.mxu1 %v3852_v7 }
  0xe2   : > { %1887 = vmatpush2.msra.mxu0 %v1334_v31  ;;  %2108 = vmatpush2.msra.mxu1 %v1368_v8  ;;  %v1365_v31 = vld [vmem:[#allocation7 + $0x3c8] sm:$0xff]  ;;  %v3940_v8 = vld [vmem:[#allocation2 + $0x122] sm:$0xff] }
  0xe3   : > { %1564 = vmatmul.mubr.f32.gmra.mxu0 %v3877_v17  ;;  %1789 = vmatmul.mubr.f32.gmra.mxu1 %v3907_v26 }
  0xe4   : > { %1568 = vmatprep.mubr.f32.mxu0 %v4589_v27  ;;  %1793 = vmatprep.mubr.f32.mxu1 %v3910_v52  ;;  %v3951_v27 = vld [vmem:[#allocation2 + $0x12a] sm:$0xff] }
  0xe5   : > { %1888 = vmatprep.subr.mxu0 %v3852_v7  ;;  %2109 = vmatprep.subr.mxu1 %v3852_v7 }
  0xe6   : > { %1889 = vmatpush2.msra.mxu0 %v1333_v58  ;;  %2110 = vmatpush2.msra.mxu1 %v1367_v12  ;;  %v1330_v58 = vld [vmem:[#allocation7 + $0x2b0] sm:$0xff]  ;;  %v1364_v12 = vld [vmem:[#allocation7 + $0x3c0] sm:$0xff] }
  0xe7   : > { %1569 = vmatmul.mubr.f32.gmra.mxu0 %v3888_v19  ;;  %1794 = vmatmul.mubr.f32.gmra.mxu1 %v3918_v13 }
  0xe8   : > { %1573 = vmatprep.mubr.f32.mxu0 %v4590_v39  ;;  %1798 = vmatprep.mubr.f32.mxu1 %v3921_v4  ;;  %v1363_v39 = vld [vmem:[#allocation7 + $0x3b8] sm:$0xff] }
  0xe9   : > { %1890 = vmatprep.subr.mxu0 %v3852_v7  ;;  %2111 = vmatprep.subr.mxu1 %v3852_v7 }
  0xea   : > { %1891 = vmatpush2.msra.mxu0 %v1332_v63  ;;  %2112 = vmatpush2.msra.mxu1 %v1366_v21  ;;  %v3954_v63 = vld [vmem:[#allocation2 + $0x150] sm:$0xff]  ;;  %v1329_v21 = vld [vmem:[#allocation7 + $0x2a8] sm:$0xff] }
  0xeb   : > { %1574 = vmatmul.mubr.f32.gmra.mxu0 %v3899_v23  ;;  %1799 = vmatmul.mubr.f32.gmra.mxu1 %v3929_v46 }
  0xec   : > { %1578 = vmatprep.mubr.f32.mxu0 %v4591_v53  ;;  %1803 = vmatprep.mubr.f32.mxu1 %v3932_v9  ;;  %v1328_v53 = vld [vmem:[#allocation7 + $0x2a0] sm:$0xff] }
  0xed   : > { %1892 = vmatprep.subr.mxu0 %v3852_v7  ;;  %2113 = vmatprep.subr.mxu1 %v3852_v7 }
  0xee   : > { %1893 = vmatpush2.msra.mxu0 %v1331_v16  ;;  %2114 = vmatpush2.msra.mxu1 %v1365_v31  ;;  %v3962_v16 = vld [vmem:[#allocation2 + $0x13a] sm:$0xff] }
  0xef   : > { %1579 = vmatmul.mubr.f32.gmra.mxu0 %v3910_v52  ;;  %1804 = vmatmul.mubr.f32.gmra.mxu1 %v3940_v8  ;;  %v3965_v31 = vld [vmem:[#allocation2 + $0x158] sm:$0xff] }
  0xf0   : > { %1583 = vmatprep.mubr.f32.mxu0 %v4592_v59  ;;  %1808 = vmatprep.mubr.f32.mxu1 %v3943_v24  ;;  %v3976_v59 = vld [vmem:[#allocation2 + $0x168] sm:$0xff] }
  0xf1   : > { %1894 = vmatprep.subr.mxu0 %v3852_v7  ;;  %2115 = vmatprep.subr.mxu1 %v3852_v7 }
  0xf2   : > { %1895 = vmatpush2.msra.mxu0 %v1330_v58  ;;  %2116 = vmatpush2.msra.mxu1 %v1364_v12  ;;  %v1362_v58 = vld [vmem:[#allocation7 + $0x3b0] sm:$0xff] }
  0xf3   : > { %1584 = vmatmul.mubr.f32.gmra.mxu0 %v3921_v4  ;;  %1809 = vmatmul.mubr.f32.gmra.mxu1 %v3951_v27  ;;  %v3973_v12 = vld [vmem:[#allocation2 + $0x142] sm:$0xff] }
  0xf4   : > { %1588 = vmatprep.mubr.f32.mxu0 %v4593_v3  ;;  %1813 = vmatprep.mubr.f32.mxu1 %v3954_v63  ;;  %v3984_v3 = vld [vmem:[#allocation2 + $0x152] sm:$0xff] }
  0xf5   : > { %1896 = vmatprep.subr.mxu0 %v3852_v7  ;;  %2117 = vmatprep.subr.mxu1 %v3852_v7 }
  0xf6   : > { %1897 = vmatpush2.msra.mxu0 %v1329_v21  ;;  %2118 = vmatpush2.msra.mxu1 %v1363_v39  ;;  %v1327_v21 = vld [vmem:[#allocation7 + $0x298] sm:$0xff]  ;;  %v1361_v39 = vld [vmem:[#allocation7 + $0x3a8] sm:$0xff] }
  0xf7   : > { %1589 = vmatmul.mubr.f32.gmra.mxu0 %v3932_v9  ;;  %1814 = vmatmul.mubr.f32.gmra.mxu1 %v3962_v16 }
  0xf8   : > { %1593 = vmatprep.mubr.f32.mxu0 %v4594_v11  ;;  %1818 = vmatprep.mubr.f32.mxu1 %v3965_v31  ;;  %v3987_v11 = vld [vmem:[#allocation2 + $0x170] sm:$0xff] }
  0xf9   : > { %1898 = vmatprep.subr.mxu0 %v3852_v7  ;;  %2119 = vmatprep.subr.mxu1 %v3852_v7  ;;  %4596 = vst [vmem:[#allocation16_spill] sm:$0xff] %v3987_v11 }
  0xfa   : > { %1899 = vmatpush2.msra.mxu0 %v1328_v53  ;;  %2120 = vmatpush2.msra.mxu1 %v1362_v58  ;;  %v1326_v53 = vld [vmem:[#allocation7 + $0x290] sm:$0xff]  ;;  %v1360_v58 = vld [vmem:[#allocation7 + $0x3a0] sm:$0xff] }
  0xfb   : > { %1594 = vmatmul.mubr.f32.gmra.mxu0 %v3943_v24  ;;  %1819 = vmatmul.mubr.f32.gmra.mxu1 %v3973_v12 }
  0xfc   : > { %1598 = vmatprep.mubr.f32.mxu0 %v4595_v22  ;;  %1823 = vmatprep.mubr.f32.mxu1 %v3976_v59  ;;  %v3995_v22 = vld [vmem:[#allocation2 + $0x15a] sm:$0xff] }
  0xfd   : > { %1900 = vmatprep.subr.mxu0 %v3852_v7  ;;  %2121 = vmatprep.subr.mxu1 %v3852_v7 }
  0xfe   : > { %1901 = vmatpush2.msra.mxu0 %v1327_v21  ;;  %2122 = vmatpush2.msra.mxu1 %v1361_v39  ;;  %v1325_v21 = vld [vmem:[#allocation7 + $0x288] sm:$0xff]  ;;  %v1359_v39 = vld [vmem:[#allocation7 + $0x398] sm:$0xff] }
  0xff   : > { %1599 = vmatmul.mubr.f32.gmra.mxu0 %v3954_v63  ;;  %1824 = vmatmul.mubr.f32.gmra.mxu1 %v3984_v3 }
 0x100   : > { %1603 = vmatprep.mubr.f32.mxu0 %v4597_v1  ;;  %1828 = vmatprep.mubr.f32.mxu1 %v3987_v11  ;;  %v4006_v1 = vld [vmem:[#allocation2 + $0x16a] sm:$0xff] }
 0x101   : > { %1902 = vmatprep.subr.mxu0 %v3852_v7  ;;  %2123 = vmatprep.subr.mxu1 %v3852_v7  ;;  %4600 = vst [vmem:[#allocation18_spill] sm:$0xff] %v4006_v1 }
 0x102   : > { %1903 = vmatpush2.msra.mxu0 %v1326_v53  ;;  %2124 = vmatpush2.msra.mxu1 %v1360_v58  ;;  %v4010_v53 = vld [vmem:[#allocation2 + $0x188] sm:$0xff]  ;;  %v1358_v58 = vld [vmem:[#allocation7 + $0x390] sm:$0xff] }
 0x103   : > { %1604 = vmatmul.mubr.f32.gmra.mxu0 %v3965_v31  ;;  %1829 = vmatmul.mubr.f32.gmra.mxu1 %v3995_v22  ;;  %4601 = vst [vmem:[#allocation19_spill] sm:$0xff] %v4010_v53 }
 0x104   : > { %1608 = vmatprep.mubr.f32.mxu0 %v4599_v10  ;;  %1833 = vmatprep.mubr.f32.mxu1 %v3999_v5  ;;  %v4017_v10 = vld [vmem:[#allocation2 + $0x172] sm:$0xff] }
 0x105   : > { %1904 = vmatprep.subr.mxu0 %v3852_v7  ;;  %2125 = vmatprep.subr.mxu1 %v3852_v7  ;;  %4603 = vst [vmem:[#allocation20_spill] sm:$0xff] %v4017_v10  ;;  %v1324_v5 = vld [vmem:[#allocation7 + $0x280] sm:$0xff] }
 0x106   : > { %1905 = vmatpush2.msra.mxu0 %v1325_v21  ;;  %2126 = vmatpush2.msra.mxu1 %v1359_v39  ;;  %v1357_v21 = vld [vmem:[#allocation7 + $0x388] sm:$0xff]  ;;  %v1356_v39 = vld [vmem:[#allocation7 + $0x380] sm:$0xff] }
 0x107   : > { %1609 = vmatmul.mubr.f32.gmra.mxu0 %v3976_v59  ;;  %1834 = vmatmul.mubr.f32.gmra.mxu1 %v4006_v1  ;;  %v827_v1 = vld [vmem:[#allocation2 + $0x31] sm:$0xff] }
 0x108   : > { %2127 = vmatprep.subr.mxu1 %v3852_v7  ;;  %1613 = vmatprep.mubr.f32.mxu0 %v4602_v15  ;;  %v763_v15 = vld [vmem:[#allocation2 + $0x30] sm:$0xff] }
 0x109   : > { %1838 = vmatprep.mubr.f32.mxu1 %v4010_v53  ;;  %2128 = vmatpush2.msra.mxu1 %v1358_v58  ;;  %v1387_v58 = vld [vmem:[#allocation7 + $0x478] sm:$0xff]  ;;  %v1386_v53 = vld [vmem:[#allocation7 + $0x470] sm:$0xff] }
 0x10a   : > { %1906 = vmatprep.subr.mxu0 %v3852_v7  ;;  %2129 = vmatprep.subr.mxu1 %v3852_v7 }
 0x10b   : > { %1614 = vmatmul.mubr.f32.gmra.mxu0 %v3987_v11  ;;  %1839 = vmatmul.mubr.f32.gmra.mxu1 %v4017_v10  ;;  %v635_v10 = vld [vmem:[#allocation2 + $0x21] sm:$0xff]  ;;  %v764_v11 = vld [vmem:[#allocation2 + $0x38] sm:$0xff] }
 0x10c   : > { %1907 = vmatpush2.msra.mxu0 %v1324_v5  ;;  %2130 = vmatpush2.msra.mxu1 %v1357_v21  ;;  %v3058_v5 = vld [vmem:[#allocation2 + $0x39] sm:$0xff] }
 0x10d   : > { %2131 = vmatprep.subr.mxu1 %v3852_v7  ;;  %1908 = vmatprep.mubr.f32.mxu0 %v3703_v2  ;;  %v1385_v21 = vld [vmem:[#allocation7 + $0x468] sm:$0xff]  ;;  %v3059_v2 = vld [vmem:[#allocation2 + $0x49] sm:$0xff] }
 0x10e   : > { %2132 = vmatpush2.msra.mxu1 %v1356_v39  ;;  %2133 = vmatprep.mubr.f32.mxu1 %v827_v1  ;;  %v3060_v39 = vld [vmem:[#allocation2 + $0x51] sm:$0xff] }
 0x10f   : > { %1909 = vmatmul.mubr.f32.vlgmr.msra.gmra.mxu0 %v634_v47  ;;  %2134 = vmatmul.mubr.f32.vlgmr.msra.gmra.mxu1 %v763_v15  ;;  %v637_v47 = vld [vmem:[#allocation2 + $0x39] sm:$0xff]  ;;  %v641_v15 = vld [vmem:[#allocation2 + $0x69] sm:$0xff] }
 0x110   : > { %2878 = vmatprep.subr.mxu0 %v1387_v58  ;;  %1913 = vmatprep.mubr.f32.mxu0 %v3710_v25  ;;  %v1384_v25 = vld [vmem:[#allocation7 + $0x460] sm:$0xff] }
 0x111   : > { %2879 = vmatpush3.msra.mxu0 %v1387_v58  ;;  %2138 = vmatprep.mubr.f32.mxu1 %v3058_v5 }
 0x112   : > { %2880 = vmatprep.subr.mxu0 %v1386_v53  ;;  %2958 = vmatprep.subr.mxu1 %v1387_v58 }
 0x113   : > { %1914 = vmatmul.mubr.f32.gmra.mxu0 %v635_v10  ;;  %2139 = vmatmul.mubr.f32.gmra.mxu1 %v764_v11  ;;  %v3061_v11 = vld [vmem:[#allocation2 + $0x61] sm:$0xff] }
 0x114   : > { %1918 = vmatprep.mubr.f32.mxu0 %v3720_v30  ;;  %2143 = vmatprep.mubr.f32.mxu1 %v3059_v2  ;;  %v1383_v30 = vld [vmem:[#allocation7 + $0x458] sm:$0xff] }
 0x115   : > { %2881 = vmatpush3.msra.mxu0 %v1386_v53  ;;  %2974 = vmatpush3.msra.mxu1 %v1387_v58  ;;  %v640_v10 = vld [vmem:[#allocation2 + $0x61] sm:$0xff] }
 0x116   : > { %2882 = vmatprep.subr.mxu0 %v1385_v21  ;;  %2959 = vmatprep.subr.mxu1 %v1386_v53 }
 0x117   : > { %1919 = vmatmul.mubr.f32.gmra.mxu0 %v827_v1  ;;  %2144 = vmatmul.mubr.f32.gmra.mxu1 %v3713_v28  ;;  %v638_v1 = vld [vmem:[#allocation2 + $0x49] sm:$0xff]  ;;  %v1382_v28 = vld [vmem:[#allocation7 + $0x450] sm:$0xff] }
 0x118   : > { %1923 = vmatprep.mubr.f32.mxu0 %v3730_v33  ;;  %2148 = vmatprep.mubr.f32.mxu1 %v3060_v39  ;;  %v3062_v33 = vld [vmem:[#allocation2 + $0x69] sm:$0xff] }
 0x119   : > { %2883 = vmatpush3.msra.mxu0 %v1385_v21  ;;  %2975 = vmatpush3.msra.mxu1 %v1386_v53  ;;  %v639_v53 = vld [vmem:[#allocation2 + $0x51] sm:$0xff] }
 0x11a   : > { %2884 = vmatprep.subr.mxu0 %v1384_v25  ;;  %2960 = vmatprep.subr.mxu1 %v1385_v21 }
 0x11b   : > { %1924 = vmatmul.mubr.f32.gmra.mxu0 %v637_v47  ;;  %2149 = vmatmul.mubr.f32.gmra.mxu1 %v3723_v32  ;;  %v1381_v32 = vld [vmem:[#allocation7 + $0x448] sm:$0xff] }
 0x11c   : > { %1928 = vmatprep.mubr.f32.mxu0 %v3740_v34  ;;  %2153 = vmatprep.mubr.f32.mxu1 %v3061_v11  ;;  %v3063_v34 = vld [vmem:[#allocation2 + $0x79] sm:$0xff] }
 0x11d   : > { %2885 = vmatpush3.msra.mxu0 %v1384_v25  ;;  %2976 = vmatpush3.msra.mxu1 %v1385_v21 }
 0x11e   : > { %2886 = vmatprep.subr.mxu0 %v1383_v30  ;;  %2961 = vmatprep.subr.mxu1 %v1384_v25 }
 0x11f   : > { %1929 = vmatmul.mubr.f32.gmra.mxu0 %v638_v1  ;;  %2154 = vmatmul.mubr.f32.gmra.mxu1 %v3733_v36  ;;  %v1380_v36 = vld [vmem:[#allocation7 + $0x440] sm:$0xff] }
 0x120   : > { %1933 = vmatprep.mubr.f32.mxu0 %v3751_v38  ;;  %2158 = vmatprep.mubr.f32.mxu1 %v3062_v33  ;;  %v3064_v38 = vld [vmem:[#allocation2 + $0x81] sm:$0xff] }
 0x121   : > { %2887 = vmatpush3.msra.mxu0 %v1383_v30  ;;  %2977 = vmatpush3.msra.mxu1 %v1384_v25 }
 0x122   : > { %2888 = vmatprep.subr.mxu0 %v1382_v28  ;;  %2962 = vmatprep.subr.mxu1 %v1383_v30 }
 0x123   : > { %1934 = vmatmul.mubr.f32.gmra.mxu0 %v639_v53  ;;  %2159 = vmatmul.mubr.f32.gmra.mxu1 %v3743_v37  ;;  %v1379_v37 = vld [vmem:[#allocation7 + $0x438] sm:$0xff] }
 0x124   : > { %1938 = vmatprep.mubr.f32.mxu0 %v3762_v41  ;;  %2163 = vmatprep.mubr.f32.mxu1 %v3063_v34  ;;  %v3065_v41 = vld [vmem:[#allocation2 + $0x91] sm:$0xff] }
 0x125   : > { %2889 = vmatpush3.msra.mxu0 %v1382_v28  ;;  %2978 = vmatpush3.msra.mxu1 %v1383_v30 }
 0x126   : > { %2890 = vmatprep.subr.mxu0 %v1381_v32  ;;  %2963 = vmatprep.subr.mxu1 %v1382_v28 }
 0x127   : > { %1939 = vmatmul.mubr.f32.gmra.mxu0 %v640_v10  ;;  %2164 = vmatmul.mubr.f32.gmra.mxu1 %v3754_v40  ;;  %v1378_v40 = vld [vmem:[#allocation7 + $0x430] sm:$0xff] }
 0x128   : > { %1943 = vmatprep.mubr.f32.mxu0 %v3773_v42  ;;  %2168 = vmatprep.mubr.f32.mxu1 %v3064_v38  ;;  %v3066_v42 = vld [vmem:[#allocation2 + $0x99] sm:$0xff] }
 0x129   : > { %2891 = vmatpush3.msra.mxu0 %v1381_v32  ;;  %2979 = vmatpush3.msra.mxu1 %v1382_v28 }
 0x12a   : > { %2892 = vmatprep.subr.mxu0 %v1380_v36  ;;  %2964 = vmatprep.subr.mxu1 %v1381_v32 }
 0x12b   : > { %1944 = vmatmul.mubr.f32.gmra.mxu0 %v641_v15  ;;  %2169 = vmatmul.mubr.f32.gmra.mxu1 %v3765_v43  ;;  %v1377_v43 = vld [vmem:[#allocation7 + $0x428] sm:$0xff] }
 0x12c   : > { %1948 = vmatprep.mubr.f32.mxu0 %v3784_v45  ;;  %2173 = vmatprep.mubr.f32.mxu1 %v3065_v41  ;;  %v3067_v45 = vld [vmem:[#allocation2 + $0xa9] sm:$0xff] }
 0x12d   : > { %2893 = vmatpush3.msra.mxu0 %v1380_v36  ;;  %2980 = vmatpush3.msra.mxu1 %v1381_v32 }
 0x12e   : > { %2894 = vmatprep.subr.mxu0 %v1379_v37  ;;  %2965 = vmatprep.subr.mxu1 %v1380_v36 }
 0x12f   : > { %1949 = vmatmul.mubr.f32.gmra.mxu0 %v3063_v34  ;;  %2174 = vmatmul.mubr.f32.gmra.mxu1 %v3776_v44  ;;  %v1376_v44 = vld [vmem:[#allocation7 + $0x420] sm:$0xff] }
 0x130   : > { %1953 = vmatprep.mubr.f32.mxu0 %v3795_v49  ;;  %2178 = vmatprep.mubr.f32.mxu1 %v3066_v42  ;;  %v3068_v49 = vld [vmem:[#allocation2 + $0xb1] sm:$0xff] }
 0x131   : > { %2895 = vmatpush3.msra.mxu0 %v1379_v37  ;;  %2981 = vmatpush3.msra.mxu1 %v1380_v36 }
 0x132   : > { %2896 = vmatprep.subr.mxu0 %v1378_v40  ;;  %2966 = vmatprep.subr.mxu1 %v1379_v37 }
 0x133   : > { %1954 = vmatmul.mubr.f32.gmra.mxu0 %v3064_v38  ;;  %2179 = vmatmul.mubr.f32.gmra.mxu1 %v3787_v48  ;;  %v1375_v48 = vld [vmem:[#allocation7 + $0x418] sm:$0xff] }
 0x134   : > { %1958 = vmatprep.mubr.f32.mxu0 %v3806_v51  ;;  %2183 = vmatprep.mubr.f32.mxu1 %v3067_v45  ;;  %v3069_v51 = vld [vmem:[#allocation2 + $0xc1] sm:$0xff] }
 0x135   : > { %2897 = vmatpush3.msra.mxu0 %v1378_v40  ;;  %2982 = vmatpush3.msra.mxu1 %v1379_v37 }
 0x136   : > { %2898 = vmatprep.subr.mxu0 %v1377_v43  ;;  %2967 = vmatprep.subr.mxu1 %v1378_v40 }
 0x137   : > { %1959 = vmatmul.mubr.f32.gmra.mxu0 %v3065_v41  ;;  %2184 = vmatmul.mubr.f32.gmra.mxu1 %v3798_v50  ;;  %v1374_v50 = vld [vmem:[#allocation7 + $0x410] sm:$0xff] }
 0x138   : > { %1963 = vmatprep.mubr.f32.mxu0 %v3817_v55  ;;  %2188 = vmatprep.mubr.f32.mxu1 %v3068_v49  ;;  %v3070_v55 = vld [vmem:[#allocation2 + $0xc9] sm:$0xff] }
 0x139   : > { %2899 = vmatpush3.msra.mxu0 %v1377_v43  ;;  %2983 = vmatpush3.msra.mxu1 %v1378_v40 }
 0x13a   : > { %2900 = vmatprep.subr.mxu0 %v1376_v44  ;;  %2968 = vmatprep.subr.mxu1 %v1377_v43 }
 0x13b   : > { %1964 = vmatmul.mubr.f32.gmra.mxu0 %v3066_v42  ;;  %2189 = vmatmul.mubr.f32.gmra.mxu1 %v3809_v54  ;;  %v1373_v54 = vld [vmem:[#allocation7 + $0x408] sm:$0xff] }
 0x13c   : > { %1968 = vmatprep.mubr.f32.mxu0 %v3828_v57  ;;  %2193 = vmatprep.mubr.f32.mxu1 %v3069_v51  ;;  %v3071_v57 = vld [vmem:[#allocation2 + $0xd9] sm:$0xff] }
 0x13d   : > { %2901 = vmatpush3.msra.mxu0 %v1376_v44  ;;  %2984 = vmatpush3.msra.mxu1 %v1377_v43 }
 0x13e   : > { %2902 = vmatprep.subr.mxu0 %v1375_v48  ;;  %2969 = vmatprep.subr.mxu1 %v1376_v44 }
 0x13f   : > { %1969 = vmatmul.mubr.f32.gmra.mxu0 %v3067_v45  ;;  %2194 = vmatmul.mubr.f32.gmra.mxu1 %v3820_v56  ;;  %v1372_v56 = vld [vmem:[#allocation7 + $0x400] sm:$0xff] }
 0x140   : > { %1973 = vmatprep.mubr.f32.mxu0 %v3839_v61  ;;  %2198 = vmatprep.mubr.f32.mxu1 %v3070_v55  ;;  %v3072_v61 = vld [vmem:[#allocation2 + $0xe1] sm:$0xff] }
 0x141   : > { %2903 = vmatpush3.msra.mxu0 %v1375_v48  ;;  %2985 = vmatpush3.msra.mxu1 %v1376_v44 }
 0x142   : > { %2904 = vmatprep.subr.mxu0 %v1374_v50  ;;  %2970 = vmatprep.subr.mxu1 %v1375_v48 }
 0x143   : > { %1974 = vmatmul.mubr.f32.gmra.mxu0 %v3068_v49  ;;  %2199 = vmatmul.mubr.f32.gmra.mxu1 %v3831_v60  ;;  %v3073_v60 = vld [vmem:[#allocation2 + $0xf1] sm:$0xff] }
 0x144   : > { %1978 = vmatprep.mubr.f32.mxu0 %v3850_v6  ;;  %2203 = vmatprep.mubr.f32.mxu1 %v3071_v57 }
 0x145   : > { %2905 = vmatpush3.msra.mxu0 %v1374_v50  ;;  %2986 = vmatpush3.msra.mxu1 %v1375_v48 }
 0x146   : > { %2906 = vmatprep.subr.mxu0 %v1373_v54  ;;  %2971 = vmatprep.subr.mxu1 %v1374_v50 }
 0x147   : > { %1979 = vmatmul.mubr.f32.gmra.mxu0 %v3069_v51  ;;  %2204 = vmatmul.mubr.f32.gmra.mxu1 %v3842_v62  ;;  %v4059_v62 = vld [vmem:[%s4554_s2] ss:$0 sm:$0xff] }
 0x148   : > { %1983 = vmatprep.mubr.f32.mxu0 %v3863_v35  ;;  %2208 = vmatprep.mubr.f32.mxu1 %v3072_v61 }
 0x149   : > { %2907 = vmatpush3.msra.mxu0 %v1373_v54  ;;  %2987 = vmatpush3.msra.mxu1 %v1374_v50 }
 0x14a   : > { %2908 = vmatprep.subr.mxu0 %v1372_v56  ;;  %2972 = vmatprep.subr.mxu1 %v1373_v54 }
 0x14b   : > { %1984 = vmatmul.mubr.f32.gmra.mxu0 %v3070_v55  ;;  %2209 = vmatmul.mubr.f32.gmra.mxu1 %v3855_v0  ;;  %v3074_v0 = vld [vmem:[#allocation2 + $0xf9] sm:$0xff] }
 0x14c   : > { %1988 = vmatprep.mubr.f32.mxu0 %v3874_v14  ;;  %2213 = vmatprep.mubr.f32.mxu1 %v3073_v60 }
 0x14d   : > { %2909 = vmatpush3.msra.mxu0 %v1372_v56  ;;  %2988 = vmatpush3.msra.mxu1 %v1373_v54 }
 0x14e   : > { %2973 = vmatprep.subr.mxu1 %v1372_v56 }
 0x14f   : > { %v1460_v6 = vpop.f32.mrf.mxu0  ;;  %v1685_v35 = vpop.f32.mrf.mxu1  ;;  %1989 = vmatmul.mubr.f32.gmra.mxu0 %v3071_v57  ;;  %2214 = vmatmul.mubr.f32.gmra.mxu1 %v3866_v29  ;;  %v3075_v29 = vld [vmem:[#allocation2 + $0x109] sm:$0xff] }
 0x150   : > { %v1461_v58 = vadd.f32 %v4059_v62, %v1460_v6  ;;  %1993 = vmatprep.mubr.f32.mxu0 %v3885_v18  ;;  %2218 = vmatprep.mubr.f32.mxu1 %v3074_v0 }
 0x151   : > { %v1462_v14 = vpop.f32.mrf.mxu0  ;;  %v1687_v5 = vpop.f32.mrf.mxu1  ;;  %2989 = vmatpush3.msra.mxu1 %v1372_v56 }
 0x152   : > { %v4064_v21 = vadd.f32 %v1685_v35, %v1461_v58 }
 0x153   : > { %v1465_v2 = vpop.f32.mrf.mxu0  ;;  %v1690_v25 = vpop.f32.mrf.mxu1  ;;  %1994 = vmatmul.mubr.f32.gmra.mxu0 %v3072_v61  ;;  %2219 = vmatmul.mubr.f32.gmra.mxu1 %v3877_v17  ;;  %v3076_v17 = vld [vmem:[#allocation2 + $0x111] sm:$0xff] }
 0x154   : > { %v1466_v39 = vadd.f32 %v4059_v62, %v1465_v2  ;;  %1998 = vmatprep.mubr.f32.mxu0 %v3896_v20  ;;  %2223 = vmatprep.mubr.f32.mxu1 %v3075_v29 }
 0x155   : > { %v1467_v47 = vpop.f32.mrf.mxu0  ;;  %v1692_v18 = vpop.f32.mrf.mxu1 }
 0x156   : > { %v4069_v30 = vadd.f32 %v1690_v25, %v1466_v39 }
 0x157   : > { %v1470_v11 = vpop.f32.mrf.mxu0  ;;  %v1695_v1 = vpop.f32.mrf.mxu1  ;;  %1999 = vmatmul.mubr.f32.gmra.mxu0 %v3073_v60  ;;  %2224 = vmatmul.mubr.f32.gmra.mxu1 %v3888_v19  ;;  %v3077_v19 = vld [vmem:[#allocation2 + $0x121] sm:$0xff] }
 0x158   : > { %v1471_v28 = vadd.f32 %v4059_v62, %v1470_v11  ;;  %2003 = vmatprep.mubr.f32.mxu0 %v3907_v26  ;;  %2228 = vmatprep.mubr.f32.mxu1 %v3076_v17 }
 0x159   : > { %v1472_v33 = vpop.f32.mrf.mxu0  ;;  %v1697_v53 = vpop.f32.mrf.mxu1 }
 0x15a   : > { %v4074_v20 = vadd.f32 %v1695_v1, %v1471_v28 }
 0x15b   : > { %v1475_v32 = vpop.f32.mrf.mxu0  ;;  %v1700_v34 = vpop.f32.mrf.mxu1  ;;  %2004 = vmatmul.mubr.f32.gmra.mxu0 %v3074_v0  ;;  %2229 = vmatmul.mubr.f32.gmra.mxu1 %v3899_v23  ;;  %v3078_v23 = vld [vmem:[#allocation2 + $0x129] sm:$0xff] }
 0x15c   : > { %v1476_v10 = vadd.f32 %v4059_v62, %v1475_v32  ;;  %2008 = vmatprep.mubr.f32.mxu0 %v3918_v13  ;;  %2233 = vmatprep.mubr.f32.mxu1 %v3077_v19 }
 0x15d   : > { %v1477_v36 = vpop.f32.mrf.mxu0  ;;  %v1702_v38 = vpop.f32.mrf.mxu1 }
 0x15e   : > { %v4079_v26 = vadd.f32 %v1700_v34, %v1476_v10  ;;  %v4604_v34 = vld [vmem:[#allocation16_spill] sm:$0xff] }
 0x15f   : > { %v1480_v15 = vpop.f32.mrf.mxu0  ;;  %v1705_v37 = vpop.f32.mrf.mxu1  ;;  %2009 = vmatmul.mubr.f32.gmra.mxu0 %v3075_v29  ;;  %2234 = vmatmul.mubr.f32.gmra.mxu1 %v3910_v52  ;;  %v3079_v52 = vld [vmem:[#allocation2 + $0x139] sm:$0xff] }
 0x160   : > { %v1481_v41 = vadd.f32 %v4059_v62, %v1480_v15  ;;  %2013 = vmatprep.mubr.f32.mxu0 %v3929_v46  ;;  %2238 = vmatprep.mubr.f32.mxu1 %v3078_v23 }
 0x161   : > { %v1482_v40 = vpop.f32.mrf.mxu0  ;;  %v1707_v42 = vpop.f32.mrf.mxu1 }
 0x162   : > { %v4084_v13 = vadd.f32 %v1705_v37, %v1481_v41  ;;  %v4606_v41 = vld [vmem:[#allocation17_spill] sm:$0xff]  ;;  %v4607_v40 = vld [vmem:[#allocation20_spill] sm:$0xff]  ;;  %v3086_v42 = vld [vmem:[#allocation2 + $0x189] sm:$0xff] }
 0x163   : > { %v1485_v43 = vpop.f32.mrf.mxu0  ;;  %v1710_v45 = vpop.f32.mrf.mxu1  ;;  %2014 = vmatmul.mubr.f32.gmra.mxu0 %v3076_v17  ;;  %2239 = vmatmul.mubr.f32.gmra.mxu1 %v3921_v4  ;;  %v3080_v4 = vld [vmem:[#allocation2 + $0x141] sm:$0xff] }
 0x164   : > { %v1486_v44 = vadd.f32 %v4059_v62, %v1485_v43  ;;  %2018 = vmatprep.mubr.f32.mxu0 %v3940_v8  ;;  %2243 = vmatprep.mubr.f32.mxu1 %v3079_v52 }
 0x165   : > { %v1487_v49 = vpop.f32.mrf.mxu0  ;;  %v1712_v48 = vpop.f32.mrf.mxu1 }
 0x166   : > { %v4089_v46 = vadd.f32 %v1710_v45, %v1486_v44  ;;  %v4124_v44 = vld [vmem:[#allocation2 + $0x182] sm:$0xff] }
 0x167   : > { %v1490_v51 = vpop.f32.mrf.mxu0  ;;  %v1715_v50 = vpop.f32.mrf.mxu1  ;;  %2019 = vmatmul.mubr.f32.gmra.mxu0 %v3077_v19  ;;  %2244 = vmatmul.mubr.f32.gmra.mxu1 %v3932_v9  ;;  %v3081_v9 = vld [vmem:[#allocation2 + $0x151] sm:$0xff]  ;;  %v4605_v19 = vld [vmem:[#allocation18_spill] sm:$0xff] }
 0x168   : > { %v1491_v55 = vadd.f32 %v4059_v62, %v1490_v51  ;;  %2023 = vmatprep.mubr.f32.mxu0 %v3951_v27  ;;  %2248 = vmatprep.mubr.f32.mxu1 %v3080_v4 }
 0x169   : > { %v1492_v54 = vpop.f32.mrf.mxu0  ;;  %v1717_v57 = vpop.f32.mrf.mxu1 }
 0x16a   : > { %v4094_v8 = vadd.f32 %v1715_v50, %v1491_v55  ;;  %v4608_v50 = vld [vmem:[#allocation19_spill] sm:$0xff] }
 0x16b   : > { %v1495_v56 = vpop.f32.mrf.mxu0  ;;  %v1720_v61 = vpop.f32.mrf.mxu1  ;;  %2024 = vmatmul.mubr.f32.gmra.mxu0 %v3078_v23  ;;  %2249 = vmatmul.mubr.f32.gmra.mxu1 %v3943_v24  ;;  %v3082_v24 = vld [vmem:[#allocation2 + $0x159] sm:$0xff]  ;;  %v4131_v57 = vld [vmem:[#allocation2 + $0x18a] sm:$0xff] }
 0x16c   : > { %v1496_v60 = vadd.f32 %v4059_v62, %v1495_v56  ;;  %2028 = vmatprep.mubr.f32.mxu0 %v3962_v16  ;;  %2253 = vmatprep.mubr.f32.mxu1 %v3081_v9  ;;  %v858_v56 = vld [vmem:[#allocation2 + $0x1a1] sm:$0xff] }
 0x16d   : > { %v1497_v6 = vpop.f32.mrf.mxu0  ;;  %v1722_v35 = vpop.f32.mrf.mxu1 }
 0x16e   : > { %v4099_v27 = vadd.f32 %v1720_v61, %v1496_v60 }
 0x16f   : > { %v1500_v58 = vpop.f32.mrf.mxu0  ;;  %v1725_v0 = vpop.f32.mrf.mxu1  ;;  %2029 = vmatmul.mubr.f32.gmra.mxu0 %v3079_v52  ;;  %2254 = vmatmul.mubr.f32.gmra.mxu1 %v3954_v63  ;;  %v3083_v63 = vld [vmem:[#allocation2 + $0x169] sm:$0xff]  ;;  %v857_v52 = vld [vmem:[#allocation2 + $0x199] sm:$0xff] }
 0x170   : > { %v1501_v14 = vadd.f32 %v4059_v62, %v1500_v58  ;;  %2033 = vmatprep.mubr.f32.mxu0 %v3973_v12  ;;  %2258 = vmatprep.mubr.f32.mxu1 %v3082_v24 }
 0x171   : > { %v1502_v5 = vpop.f32.mrf.mxu0  ;;  %v1727_v2 = vpop.f32.mrf.mxu1 }
 0x172   : > { %v4104_v16 = vadd.f32 %v1725_v0, %v1501_v14  ;;  %v891_v0 = vld [vmem:[#allocation2 + $0x32] sm:$0xff] }
 0x173   : > { %v1505_v25 = vpop.f32.mrf.mxu0  ;;  %v1730_v39 = vpop.f32.mrf.mxu1  ;;  %2034 = vmatmul.mubr.f32.gmra.mxu0 %v3080_v4  ;;  %2259 = vmatmul.mubr.f32.gmra.mxu1 %v3965_v31  ;;  %v3084_v31 = vld [vmem:[#allocation2 + $0x171] sm:$0xff] }
 0x174   : > { %v1506_v29 = vadd.f32 %v4059_v62, %v1505_v25  ;;  %2038 = vmatprep.mubr.f32.mxu0 %v3984_v3  ;;  %2263 = vmatprep.mubr.f32.mxu1 %v3083_v63  ;;  %v907_v14 = vld [vmem:[#allocation2 + $0xf2] sm:$0xff] }
 0x175   : > { %v1507_v47 = vpop.f32.mrf.mxu0  ;;  %v1732_v18 = vpop.f32.mrf.mxu1 }
 0x176   : > { %v4109_v12 = vadd.f32 %v1730_v39, %v1506_v29  ;;  %v892_v39 = vld [vmem:[#allocation2 + $0x3a] sm:$0xff]  ;;  %v893_v18 = vld [vmem:[#allocation2 + $0x4a] sm:$0xff] }
 0x177   : > { %v1510_v11 = vpop.f32.mrf.mxu0  ;;  %v1735_v1 = vpop.f32.mrf.mxu1  ;;  %2039 = vmatmul.mubr.f32.gmra.mxu0 %v3081_v9  ;;  %2264 = vmatmul.mubr.f32.gmra.mxu1 %v3976_v59  ;;  %v3085_v59 = vld [vmem:[#allocation2 + $0x181] sm:$0xff] }
 0x178   : > { %v1511_v28 = vadd.f32 %v4059_v62, %v1510_v11  ;;  %2043 = vmatprep.mubr.f32.mxu0 %v3995_v22  ;;  %2268 = vmatprep.mubr.f32.mxu1 %v3084_v31  ;;  %v908_v29 = vld [vmem:[#allocation2 + $0xfa] sm:$0xff]  ;;  %v909_v11 = vld [vmem:[#allocation2 + $0x10a] sm:$0xff] }
 0x179   : > { %v1512_v17 = vpop.f32.mrf.mxu0  ;;  %v1737_v33 = vpop.f32.mrf.mxu1 }
 0x17a   : > { %v4114_v3 = vadd.f32 %v1735_v1, %v1511_v28  ;;  %v910_v33 = vld [vmem:[#allocation2 + $0x112] sm:$0xff] }
 0x17b   : > { %v1515_v53 = vpop.f32.mrf.mxu0  ;;  %v1740_v32 = vpop.f32.mrf.mxu1  ;;  %2044 = vmatmul.mubr.f32.gmra.mxu0 %v3082_v24  ;;  %2269 = vmatmul.mubr.f32.gmra.mxu1 %v4604_v34  ;;  %v895_v34 = vld [vmem:[#allocation2 + $0x62] sm:$0xff] }
 0x17c   : > { %v1516_v10 = vadd.f32 %v4059_v62, %v1515_v53  ;;  %2048 = vmatprep.mubr.f32.mxu0 %v4605_v19  ;;  %2273 = vmatprep.mubr.f32.mxu1 %v3085_v59 }
 0x17d   : > { %v1517_v36 = vpop.f32.mrf.mxu0  ;;  %v1742_v38 = vpop.f32.mrf.mxu1 }
 0x17e   : > { %v4119_v22 = vadd.f32 %v1740_v32, %v1516_v10  ;;  %v911_v10 = vld [vmem:[#allocation2 + $0x122] sm:$0xff] }
 0x17f   : > { %v1520_v15 = vpop.f32.mrf.mxu0  ;;  %v1745_v37 = vpop.f32.mrf.mxu1  ;;  %2049 = vmatmul.mubr.f32.gmra.mxu0 %v3083_v63  ;;  %2274 = vmatmul.mubr.f32.gmra.mxu1 %v4606_v41 }
 0x180   : > { %v1521_v23 = vadd.f32 %v4059_v62, %v1520_v15  ;;  %2053 = vmatprep.mubr.f32.mxu0 %v4607_v40  ;;  %2278 = vmatprep.mubr.f32.mxu1 %v3086_v42  ;;  %v896_v15 = vld [vmem:[#allocation2 + $0x6a] sm:$0xff]  ;;  %v897_v40 = vld [vmem:[#allocation2 + $0x7a] sm:$0xff] }
 0x181   : > { %v1522_v43 = vpop.f32.mrf.mxu0  ;;  %v1747_v45 = vpop.f32.mrf.mxu1 }
 0x182   : > { %v4126_v49 = vadd.f32 %v1745_v37, %v1521_v23  ;;  %v912_v37 = vld [vmem:[#allocation2 + $0x12a] sm:$0xff] }
 0x183   : > { %v1525_v48 = vpop.f32.mrf.mxu0  ;;  %v1750_v51 = vpop.f32.mrf.mxu1  ;;  %2054 = vmatmul.mubr.f32.gmra.mxu0 %v3084_v31  ;;  %2279 = vmatmul.mubr.f32.gmra.mxu1 %v4608_v50  ;;  %v914_v50 = vld [vmem:[#allocation2 + $0x142] sm:$0xff] }
 0x184   : > { %v1526_v55 = vadd.f32 %v4059_v62, %v1525_v48  ;;  %2058 = vmatprep.mubr.f32.mxu0 %v4124_v44  ;;  %2283 = vmatprep.mubr.f32.mxu1 %v857_v52 }
 0x185   : > { %v1527_v4 = vpop.f32.mrf.mxu0  ;;  %v1752_v54 = vpop.f32.mrf.mxu1 }
 0x186   : > { %v4133_v61 = vadd.f32 %v1750_v51, %v1526_v55  ;;  %v898_v51 = vld [vmem:[#allocation2 + $0x82] sm:$0xff]  ;;  %v899_v54 = vld [vmem:[#allocation2 + $0x92] sm:$0xff] }
 0x187   : > { %v1530_v60 = vpop.f32.mrf.mxu0  ;;  %v1755_v9 = vpop.f32.mrf.mxu1  ;;  %2059 = vmatmul.mubr.f32.gmra.mxu0 %v3085_v59  ;;  %2284 = vmatmul.mubr.f32.gmra.mxu1 %v3852_v7 }
 0x188   : > { %v1531_v6 = vadd.f32 %v4059_v62, %v1530_v60  ;;  %2063 = vmatprep.mubr.f32.mxu0 %v4131_v57  ;;  %2288 = vmatprep.mubr.f32.mxu1 %v858_v56  ;;  %v915_v56 = vld [vmem:[#allocation2 + $0x152] sm:$0xff] }
 0x189   : > { %v1532_v35 = vpop.f32.mrf.mxu0  ;;  %v1757_v58 = vpop.f32.mrf.mxu1 }
 0x18a   : > { %v4138_v24 = vadd.f32 %v1755_v9, %v1531_v6  ;;  %v900_v58 = vld [vmem:[#allocation2 + $0x9a] sm:$0xff] }
 0x18b   : > { %v1535_v5 = vpop.f32.mrf.mxu0  ;;  %v1760_v2 = vpop.f32.mrf.mxu1  ;;  %2064 = vmatmul.mubr.f32.gmra.mxu0 %v3086_v42  ;;  %2289 = vmatmul.mubr.f32.gmra.mxu1 %v3852_v7  ;;  %v894_v7 = vld [vmem:[#allocation2 + $0x52] sm:$0xff]  ;;  %v913_v42 = vld [vmem:[#allocation2 + $0x13a] sm:$0xff] }
 0x18c   : > { %v1536_v25 = vadd.f32 %v4059_v62, %v1535_v5  ;;  %2910 = vmatprep.mubr.f32.mxu0 %v891_v0  ;;  %2934 = vmatprep.mubr.f32.mxu1 %v907_v14  ;;  %v916_v0 = vld [vmem:[#allocation2 + $0x15a] sm:$0xff] }
 0x18d   : > { %v1537_v63 = vpop.f32.mrf.mxu0  ;;  %v1762_v47 = vpop.f32.mrf.mxu1 }
 0x18e   : > { %v4142_v1 = vadd.f32 %v1760_v2, %v1536_v25  ;;  %v901_v2 = vld [vmem:[#allocation2 + $0xaa] sm:$0xff] }
 0x18f   : > { %v1540_v28 = vpop.f32.mrf.mxu0  ;;  %v1765_v31 = vpop.f32.mrf.mxu1  ;;  %2911 = vmatmul.mubr.f32.vlgmr.msra.gmra.mxu0 %v892_v39  ;;  %2935 = vmatmul.mubr.f32.vlgmr.msra.gmra.mxu1 %v908_v29  ;;  %v917_v25 = vld [vmem:[#allocation2 + $0x16a] sm:$0xff] }
 0x190   : > { %v1541_v17 = vadd.f32 %v4059_v62, %v1540_v28  ;;  %2913 = vmatprep.mubr.f32.mxu0 %v893_v18  ;;  %2937 = vmatprep.mubr.f32.mxu1 %v909_v11  ;;  %v902_v18 = vld [vmem:[#allocation2 + $0xb2] sm:$0xff] }
 0x191   : > { %v1542_v53 = vpop.f32.mrf.mxu0  ;;  %v1767_v32 = vpop.f32.mrf.mxu1  ;;  %v918_v11 = vld [vmem:[#allocation2 + $0x172] sm:$0xff] }
 0x192   : > { %v4145_v19 = vadd.f32 %v1765_v31, %v1541_v17  ;;  %v903_v17 = vld [vmem:[#allocation2 + $0xc2] sm:$0xff] }
 0x193   : > { %v1545_v59 = vpop.f32.mrf.mxu0  ;;  %v1770_v36 = vpop.f32.mrf.mxu1  ;;  %2914 = vmatmul.mubr.f32.gmra.mxu0 %v894_v7  ;;  %2938 = vmatmul.mubr.f32.gmra.mxu1 %v910_v33 }
 0x194   : > { %v1546_v38 = vadd.f32 %v4059_v62, %v1545_v59  ;;  %2916 = vmatprep.mubr.f32.mxu0 %v895_v34  ;;  %2940 = vmatprep.mubr.f32.mxu1 %v911_v10  ;;  %v904_v34 = vld [vmem:[#allocation2 + $0xca] sm:$0xff] }
 0x195   : > { %v1547_v41 = vpop.f32.mrf.mxu0  ;;  %v1772_v23 = vpop.f32.mrf.mxu1 }
 0x196   : > { %v4148_v43 = vadd.f32 %v1770_v36, %v1546_v38  ;;  %v905_v36 = vld [vmem:[#allocation2 + $0xda] sm:$0xff] }
 0x197   : > { %v1550_v45 = vpop.f32.mrf.mxu0  ;;  %v1775_v52 = vpop.f32.mrf.mxu1  ;;  %2917 = vmatmul.mubr.f32.gmra.mxu0 %v896_v15  ;;  %2941 = vmatmul.mubr.f32.gmra.mxu1 %v912_v37  ;;  %v921_v38 = vld [vmem:[#allocation2 + $0x19a] sm:$0xff] }
 0x198   : > { %v1551_v48 = vadd.f32 %v4059_v62, %v1550_v45  ;;  %2919 = vmatprep.mubr.f32.mxu0 %v897_v40  ;;  %2943 = vmatprep.mubr.f32.mxu1 %v913_v42  ;;  %v906_v40 = vld [vmem:[#allocation2 + $0xe2] sm:$0xff] }
 0x199   : > { %v1552_v55 = vpop.f32.mrf.mxu0  ;;  %v1777_v4 = vpop.f32.mrf.mxu1  ;;  %v922_v42 = vld [vmem:[#allocation2 + $0x1a2] sm:$0xff] }
 0x19a   : > { %v4151_v60 = vadd.f32 %v1775_v52, %v1551_v48 }
 0x19b   : > { %v1555_v9 = vpop.f32.mrf.mxu0  ;;  %v1780_v6 = vpop.f32.mrf.mxu1  ;;  %2920 = vmatmul.mubr.f32.gmra.mxu0 %v898_v51  ;;  %2944 = vmatmul.mubr.f32.gmra.mxu1 %v914_v50 }
 0x19c   : > { %v1556_v35 = vadd.f32 %v4059_v62, %v1555_v9  ;;  %2922 = vmatprep.mubr.f32.mxu0 %v899_v54  ;;  %2946 = vmatprep.mubr.f32.mxu1 %v915_v56 }
 0x19d   : > { %v1557_v14 = vpop.f32.mrf.mxu0  ;;  %v1782_v5 = vpop.f32.mrf.mxu1 }
 0x19e   : > { %v4154_v39 = vadd.f32 %v1780_v6, %v1556_v35 }
 0x19f   : > { %v1560_v29 = vpop.f32.mrf.mxu0  ;;  %v1785_v63 = vpop.f32.mrf.mxu1  ;;  %2923 = vmatmul.mubr.f32.gmra.mxu0 %v900_v58  ;;  %2947 = vmatmul.mubr.f32.gmra.mxu1 %v916_v0 }
 0x1a0   : > { %v1561_v47 = vadd.f32 %v4059_v62, %v1560_v29  ;;  %2925 = vmatprep.mubr.f32.mxu0 %v901_v2  ;;  %2949 = vmatprep.mubr.f32.mxu1 %v917_v25 }
 0x1a1   : > { %v1562_v28 = vpop.f32.mrf.mxu0  ;;  %v1787_v31 = vpop.f32.mrf.mxu1 }
 0x1a2   : > { %v4157_v7 = vadd.f32 %v1785_v63, %v1561_v47 }
 0x1a3   : > { %v1565_v33 = vpop.f32.mrf.mxu0  ;;  %v1790_v53 = vpop.f32.mrf.mxu1  ;;  %2926 = vmatmul.mubr.f32.gmra.mxu0 %v902_v18  ;;  %2950 = vmatmul.mubr.f32.gmra.mxu1 %v918_v11 }
 0x1a4   : > { %v1566_v32 = vadd.f32 %v4059_v62, %v1565_v33  ;;  %2928 = vmatprep.mubr.f32.mxu0 %v903_v17  ;;  %2952 = vmatprep.mubr.f32.mxu1 %v4124_v44 }
 0x1a5   : > { %v1567_v10 = vpop.f32.mrf.mxu0  ;;  %v1792_v59 = vpop.f32.mrf.mxu1 }
 0x1a6   : > { %v4161_v15 = vadd.f32 %v1790_v53, %v1566_v32 }
 0x1a7   : > { %v1570_v37 = vpop.f32.mrf.mxu0  ;;  %v1795_v41 = vpop.f32.mrf.mxu1  ;;  %2929 = vmatmul.mubr.f32.gmra.mxu0 %v904_v34  ;;  %2953 = vmatmul.mubr.f32.gmra.mxu1 %v4131_v57 }
 0x1a8   : > { %v1571_v23 = vadd.f32 %v4059_v62, %v1570_v37  ;;  %2931 = vmatprep.mubr.f32.mxu0 %v905_v36  ;;  %2955 = vmatprep.mubr.f32.mxu1 %v921_v38 }
 0x1a9   : > { %v1572_v45 = vpop.f32.mrf.mxu0  ;;  %v1797_v44 = vpop.f32.mrf.mxu1 }
 0x1aa   : > { %v4165_v52 = vadd.f32 %v1795_v41, %v1571_v23 }
 0x1ab   : > { %v1575_v48 = vpop.f32.mrf.mxu0  ;;  %v1800_v51 = vpop.f32.mrf.mxu1  ;;  %2932 = vmatmul.mubr.f32.gmra.mxu0 %v906_v40  ;;  %2956 = vmatmul.mubr.f32.gmra.mxu1 %v922_v42 }
 0x1ac   : > { %v1576_v50 = vadd.f32 %v4059_v62, %v1575_v48 }
 0x1ad   : > { %v1577_v55 = vpop.f32.mrf.mxu0  ;;  %v1802_v4 = vpop.f32.mrf.mxu1 }
 0x1ae   : > { %v4168_v54 = vadd.f32 %v1800_v51, %v1576_v50 }
 0x1af   : > { %v1580_v57 = vpop.f32.mrf.mxu0  ;;  %v1805_v56 = vpop.f32.mrf.mxu1 }
 0x1b0   : > { %v1581_v9 = vadd.f32 %v4059_v62, %v1580_v57 }
 0x1b1   : > { %v1582_v6 = vpop.f32.mrf.mxu0  ;;  %v1807_v35 = vpop.f32.mrf.mxu1 }
 0x1b2   : > { %v4171_v58 = vadd.f32 %v1805_v56, %v1581_v9 }
 0x1b3   : > { %v1585_v0 = vpop.f32.mrf.mxu0  ;;  %v1810_v14 = vpop.f32.mrf.mxu1 }
 0x1b4   : > { %v1586_v5 = vadd.f32 %v4059_v62, %v1585_v0 }
 0x1b5   : > { %v1587_v2 = vpop.f32.mrf.mxu0  ;;  %v1812_v25 = vpop.f32.mrf.mxu1 }
 0x1b6   : > { %v4174_v29 = vadd.f32 %v1810_v14, %v1586_v5 }
 0x1b7   : > { %v1590_v63 = vpop.f32.mrf.mxu0  ;;  %v1815_v47 = vpop.f32.mrf.mxu1 }
 0x1b8   : > { %v1591_v18 = vadd.f32 %v4059_v62, %v1590_v63 }
 0x1b9   : > { %v1592_v11 = vpop.f32.mrf.mxu0  ;;  %v1817_v28 = vpop.f32.mrf.mxu1 }
 0x1ba   : > { %v4177_v31 = vadd.f32 %v1815_v47, %v1591_v18 }
 0x1bb   : > { %v1595_v17 = vpop.f32.mrf.mxu0  ;;  %v1820_v33 = vpop.f32.mrf.mxu1 }
 0x1bc   : > { %v1596_v53 = vadd.f32 %v4059_v62, %v1595_v17 }
 0x1bd   : > { %v1597_v32 = vpop.f32.mrf.mxu0  ;;  %v1822_v34 = vpop.f32.mrf.mxu1 }
 0x1be   : > { %v4180_v10 = vadd.f32 %v1820_v33, %v1596_v53 }
 0x1bf   : > { %v1600_v59 = vpop.f32.mrf.mxu0  ;;  %v1825_v36 = vpop.f32.mrf.mxu1 }
 0x1c0   : > { %v1601_v38 = vadd.f32 %v4059_v62, %v1600_v59 }
 0x1c1   : > { %v1602_v37 = vpop.f32.mrf.mxu0  ;;  %v1827_v41 = vpop.f32.mrf.mxu1 }
 0x1c2   : > { %v4183_v23 = vadd.f32 %v1825_v36, %v1601_v38 }
 0x1c3   : > { %v1605_v40 = vpop.f32.mrf.mxu0  ;;  %v1830_v42 = vpop.f32.mrf.mxu1 }
 0x1c4   : > { %v1606_v45 = vadd.f32 %v4059_v62, %v1605_v40 }
 0x1c5   : > { %v1607_v44 = vpop.f32.mrf.mxu0  ;;  %v1832_v48 = vpop.f32.mrf.mxu1 }
 0x1c6   : > { %v4186_v51 = vadd.f32 %v1830_v42, %v1606_v45 }
 0x1c7   : > { %v1610_v50 = vpop.f32.mrf.mxu0  ;;  %v1835_v55 = vpop.f32.mrf.mxu1 }
 0x1c8   : > { %v1611_v4 = vadd.f32 %v4059_v62, %v1610_v50 }
 0x1c9   : > { %v1612_v57 = vpop.f32.mrf.mxu0  ;;  %v1837_v56 = vpop.f32.mrf.mxu1 }
 0x1ca   : > { %v4189_v9 = vadd.f32 %v1835_v55, %v1611_v4 }
 0x1cb   : > { %v1615_v6 = vpop.f32.mrf.mxu0  ;;  %v1840_v35 = vpop.f32.mrf.mxu1 }
 0x1cc   : > { %4609 = vst [vmem:[#allocation16_spill] sm:$0xff] %v4189_v9  ;;  %v1616_v0 = vadd.f32 %v4059_v62, %v1615_v6 }
 0x1cd   : > { %v1617_v14 = vpop.f32.mrf.mxu0  ;;  %v1842_v5 = vpop.f32.mrf.mxu1 }
 0x1ce   : > { %v4192_v2 = vadd.f32 %v1840_v35, %v1616_v0 }
 0x1cf   : > { %v1910_v25 = vpop.f32.mrf.mxu0  ;;  %v2135_v63 = vpop.f32.mrf.mxu1 }
 0x1d0   : > { %4610 = vst [vmem:[#allocation18_spill] sm:$0xff] %v4192_v2  ;;  %v1911_v47 = vadd.f32 %v1910_v25, %v4064_v21 }
 0x1d1   : > { %v1912_v18 = vpop.f32.mrf.mxu0  ;;  %v2137_v11 = vpop.f32.mrf.mxu1 }
 0x1d2   : > { %v4195_v28 = vadd.f32 %v2135_v63, %v1911_v47 }
 0x1d3   : > { %v1915_v17 = vpop.f32.mrf.mxu0  ;;  %v2140_v33 = vpop.f32.mrf.mxu1 }
 0x1d4   : > { %v1916_v53 = vadd.f32 %v1915_v17, %v4069_v30 }
 0x1d5   : > { %v1917_v32 = vpop.f32.mrf.mxu0  ;;  %v2142_v34 = vpop.f32.mrf.mxu1 }
 0x1d6   : > { %v4198_v59 = vadd.f32 %v2140_v33, %v1916_v53 }
 0x1d7   : > { %v1920_v62 = vpop.f32.mrf.mxu0  ;;  %v2145_v36 = vpop.f32.mrf.mxu1 }
 0x1d8   : > { %v1921_v38 = vadd.f32 %v1920_v62, %v4074_v20 }
 0x1d9   : > { %v1922_v37 = vpop.f32.mrf.mxu0  ;;  %v2147_v41 = vpop.f32.mrf.mxu1 }
 0x1da   : > { %v4201_v40 = vadd.f32 %v2145_v36, %v1921_v38 }
 0x1db   : > { %v1925_v21 = vpop.f32.mrf.mxu0  ;;  %v2150_v42 = vpop.f32.mrf.mxu1 }
 0x1dc   : > { %v1926_v45 = vadd.f32 %v1925_v21, %v4079_v26 }
 0x1dd   : > { %v1927_v44 = vpop.f32.mrf.mxu0  ;;  %v2152_v48 = vpop.f32.mrf.mxu1 }
 0x1de   : > { %v4204_v50 = vadd.f32 %v2150_v42, %v1926_v45 }
 0x1df   : > { %v1930_v30 = vpop.f32.mrf.mxu0  ;;  %v2155_v55 = vpop.f32.mrf.mxu1 }
 0x1e0   : > { %v1931_v4 = vadd.f32 %v1930_v30, %v4084_v13 }
 0x1e1   : > { %v1932_v57 = vpop.f32.mrf.mxu0  ;;  %v2157_v56 = vpop.f32.mrf.mxu1 }
 0x1e2   : > { %v4207_v6 = vadd.f32 %v2155_v55, %v1931_v4 }
 0x1e3   : > { %v1935_v20 = vpop.f32.mrf.mxu0  ;;  %v2160_v35 = vpop.f32.mrf.mxu1 }
 0x1e4   : > { %v1936_v0 = vadd.f32 %v1935_v20, %v4089_v46 }
 0x1e5   : > { %v1937_v14 = vpop.f32.mrf.mxu0  ;;  %v2162_v5 = vpop.f32.mrf.mxu1 }
 0x1e6   : > { %v4210_v25 = vadd.f32 %v2160_v35, %v1936_v0 }
 0x1e7   : > { %v1940_v26 = vpop.f32.mrf.mxu0  ;;  %v2165_v63 = vpop.f32.mrf.mxu1 }
 0x1e8   : > { %v1941_v47 = vadd.f32 %v1940_v26, %v4094_v8 }
 0x1e9   : > { %v1942_v18 = vpop.f32.mrf.mxu0  ;;  %v2167_v11 = vpop.f32.mrf.mxu1 }
 0x1ea   : > { %v4213_v17 = vadd.f32 %v2165_v63, %v1941_v47 }
 0x1eb   : > { %v1945_v13 = vpop.f32.mrf.mxu0  ;;  %v2170_v33 = vpop.f32.mrf.mxu1 }
 0x1ec   : > { %v1946_v53 = vadd.f32 %v1945_v13, %v4099_v27 }
 0x1ed   : > { %v1947_v32 = vpop.f32.mrf.mxu0  ;;  %v2172_v34 = vpop.f32.mrf.mxu1 }
 0x1ee   : > { %v4216_v62 = vadd.f32 %v2170_v33, %v1946_v53 }
 0x1ef   : > { %v1950_v46 = vpop.f32.mrf.mxu0  ;;  %v2175_v36 = vpop.f32.mrf.mxu1 }
 0x1f0   : > { %v1951_v38 = vadd.f32 %v1950_v46, %v4104_v16 }
 0x1f1   : > { %v1952_v37 = vpop.f32.mrf.mxu0  ;;  %v2177_v41 = vpop.f32.mrf.mxu1 }
 0x1f2   : > { %v4219_v21 = vadd.f32 %v2175_v36, %v1951_v38 }
 0x1f3   : > { %v1955_v8 = vpop.f32.mrf.mxu0  ;;  %v2180_v42 = vpop.f32.mrf.mxu1 }
 0x1f4   : > { %v1956_v45 = vadd.f32 %v1955_v8, %v4109_v12 }
 0x1f5   : > { %v1957_v44 = vpop.f32.mrf.mxu0  ;;  %v2182_v48 = vpop.f32.mrf.mxu1 }
 0x1f6   : > { %v4222_v30 = vadd.f32 %v2180_v42, %v1956_v45 }
 0x1f7   : > { %v1960_v27 = vpop.f32.mrf.mxu0  ;;  %v2185_v55 = vpop.f32.mrf.mxu1 }
 0x1f8   : > { %v1961_v4 = vadd.f32 %v1960_v27, %v4114_v3 }
 0x1f9   : > { %v1962_v57 = vpop.f32.mrf.mxu0  ;;  %v2187_v56 = vpop.f32.mrf.mxu1 }
 0x1fa   : > { %v4225_v20 = vadd.f32 %v2185_v55, %v1961_v4 }
 0x1fb   : > { %v1965_v16 = vpop.f32.mrf.mxu0  ;;  %v2190_v35 = vpop.f32.mrf.mxu1 }
 0x1fc   : > { %v1966_v0 = vadd.f32 %v1965_v16, %v4119_v22 }
 0x1fd   : > { %v1967_v14 = vpop.f32.mrf.mxu0  ;;  %v2192_v5 = vpop.f32.mrf.mxu1 }
 0x1fe   : > { %v4228_v26 = vadd.f32 %v2190_v35, %v1966_v0 }
 0x1ff   : > { %v1970_v12 = vpop.f32.mrf.mxu0  ;;  %v2195_v63 = vpop.f32.mrf.mxu1 }
 0x200   : > { %v1971_v47 = vadd.f32 %v1970_v12, %v4126_v49 }
 0x201   : > { %v1972_v18 = vpop.f32.mrf.mxu0  ;;  %v2197_v11 = vpop.f32.mrf.mxu1 }
 0x202   : > { %v4231_v13 = vadd.f32 %v2195_v63, %v1971_v47 }
 0x203   : > { %v1975_v3 = vpop.f32.mrf.mxu0  ;;  %v2200_v33 = vpop.f32.mrf.mxu1 }
 0x204   : > { %4611 = vst [vmem:[#allocation17_spill] sm:$0xff] %v4231_v13  ;;  %v1976_v53 = vadd.f32 %v1975_v3, %v4133_v61 }
 0x205   : > { %v1977_v32 = vpop.f32.mrf.mxu0  ;;  %v2202_v34 = vpop.f32.mrf.mxu1 }
 0x206   : > { %v4234_v46 = vadd.f32 %v2200_v33, %v1976_v53 }
 0x207   : > { %v1980_v22 = vpop.f32.mrf.mxu0  ;;  %v2205_v36 = vpop.f32.mrf.mxu1 }
 0x208   : > { %4612 = vst [vmem:[#allocation20_spill] sm:$0xff] %v4234_v46  ;;  %v1981_v38 = vadd.f32 %v1980_v22, %v4138_v24 }
 0x209   : > { %v1982_v37 = vpop.f32.mrf.mxu0  ;;  %v2207_v41 = vpop.f32.mrf.mxu1 }
 0x20a   : > { %v4237_v8 = vadd.f32 %v2205_v36, %v1981_v38 }
 0x20b   : > { %v1985_v49 = vpop.f32.mrf.mxu0  ;;  %v2210_v42 = vpop.f32.mrf.mxu1 }
 0x20c   : > { %4613 = vst [vmem:[#allocation19_spill] sm:$0xff] %v4237_v8  ;;  %v1986_v45 = vadd.f32 %v1985_v49, %v4142_v1 }
 0x20d   : > { %v1987_v44 = vpop.f32.mrf.mxu0  ;;  %v2212_v48 = vpop.f32.mrf.mxu1 }
 0x20e   : > { %v4240_v27 = vadd.f32 %v2210_v42, %v1986_v45 }
 0x20f   : > { %v1990_v61 = vpop.f32.mrf.mxu0  ;;  %v2215_v55 = vpop.f32.mrf.mxu1 }
 0x210   : > { %4614 = vst [vmem:[#allocation21_spill] sm:$0xff] %v4240_v27  ;;  %v1991_v4 = vadd.f32 %v1990_v61, %v4145_v19 }
 0x211   : > { %v1992_v57 = vpop.f32.mrf.mxu0  ;;  %v2217_v56 = vpop.f32.mrf.mxu1 }
 0x212   : > { %v4243_v16 = vadd.f32 %v2215_v55, %v1991_v4 }
 0x213   : > { %v1995_v24 = vpop.f32.mrf.mxu0  ;;  %v2220_v35 = vpop.f32.mrf.mxu1 }
 0x215   : > { %v1997_v0 = vpop.f32.mrf.mxu0  ;;  %v2222_v14 = vpop.f32.mrf.mxu1 }
 0x217   : > { %v2000_v5 = vpop.f32.mrf.mxu0  ;;  %v4245_v12 = vpop.f32.mrf.mxu1 }
 0x218   : > { %v2001_v2 = vadd.f32 %v2000_v5, %v4151_v60 }
 0x219   : > { %v2002_v1 = vpop.f32.mrf.mxu0  ;;  %v2227_v63 = vpop.f32.mrf.mxu1 }
 0x21b   : > { %v2005_v47 = vpop.f32.mrf.mxu0  ;;  %v4247_v18 = vpop.f32.mrf.mxu1 }
 0x21d   : > { %v2007_v11 = vpop.f32.mrf.mxu0  ;;  %v2232_v3 = vpop.f32.mrf.mxu1 }
 0x21f   : > { %v4249_v33 = vpop.f32.mrf.mxu0  ;;  %v4251_v19 = vpop.f32.mrf.mxu1 }
 0x221   : > { %v2012_v53 = vpop.f32.mrf.mxu0  ;;  %v2237_v32 = vpop.f32.mrf.mxu1 }
 0x223   : > { %v2015_v34 = vpop.f32.mrf.mxu0  ;;  %v4253_v22 = vpop.f32.mrf.mxu1 }
 0x225   : > { %v2017_v36 = vpop.f32.mrf.mxu0  ;;  %v2242_v38 = vpop.f32.mrf.mxu1 }
 0x227   : > { %v4255_v37 = vpop.f32.mrf.mxu0  ;;  %v4257_v41 = vpop.f32.mrf.mxu1 }
 0x229   : > { %v2022_v49 = vpop.f32.mrf.mxu0  ;;  %v2247_v42 = vpop.f32.mrf.mxu1 }
 0x22b   : > { %v4259_v45 = vpop.f32.mrf.mxu0  ;;  %v4261_v44 = vpop.f32.mrf.mxu1 }
 0x22d   : > { %v2027_v48 = vpop.f32.mrf.mxu0  ;;  %v2252_v61 = vpop.f32.mrf.mxu1 }
 0x22f   : > { %v4263_v55 = vpop.f32.mrf.mxu0  ;;  %v4265_v4 = vpop.f32.mrf.mxu1 }
 0x231   : > { %v2032_v57 = vpop.f32.mrf.mxu0  ;;  %v2257_v56 = vpop.f32.mrf.mxu1 }
 0x233   : > { %v4267_v0 = vpop.f32.mrf.mxu0  ;;  %v4269_v14 = vpop.f32.mrf.mxu1 }
 0x235   : > { %v2037_v1 = vpop.f32.mrf.mxu0  ;;  %v2262_v63 = vpop.f32.mrf.mxu1 }
 0x237   : > { %v4271_v11 = vpop.f32.mrf.mxu0  ;;  %v4273_v3 = vpop.f32.mrf.mxu1 }
 0x239   : > { %v2042_v53 = vpop.f32.mrf.mxu0  ;;  %v2267_v32 = vpop.f32.mrf.mxu1 }
 0x23b   : > { %v4275_v36 = vpop.f32.mrf.mxu0  ;;  %v4277_v38 = vpop.f32.mrf.mxu1 }
 0x23d   : > { %v2047_v49 = vpop.f32.mrf.mxu0  ;;  %v2272_v42 = vpop.f32.mrf.mxu1 }
 0x23e   : > { %v1996_v42 = vadd.f32 %v1995_v24, %v4148_v43 }
 0x23f   : > { %v4279_v48 = vpop.f32.mrf.mxu0  ;;  %v4281_v61 = vpop.f32.mrf.mxu1 }
 0x240   : > { %4615 = vst [vmem:[#allocation22_spill] sm:$0xff] %v4281_v61  ;;  %v2221_v46 = vadd.f32 %v2220_v35, %v1996_v42  ;;  %v2026_v42 = vadd.f32 %v4259_v45, %v4168_v54 }
 0x241   : > { %v2052_v57 = vpop.f32.mrf.mxu0  ;;  %v2277_v56 = vpop.f32.mrf.mxu1 }
 0x243   : > { %v4283_v1 = vpop.f32.mrf.mxu0  ;;  %v4285_v63 = vpop.f32.mrf.mxu1 }
 0x244   : > { %4616 = vst [vmem:[#allocation23_spill] sm:$0xff] %v4285_v63 }
 0x245   : > { %v2057_v8 = vpop.f32.mrf.mxu0  ;;  %v2282_v27 = vpop.f32.mrf.mxu1 }
 0x246   : > { %v2006_v8 = vadd.f32 %v2005_v47, %v4154_v39  ;;  %v2226_v39 = vadd.f32 %v4245_v12, %v2001_v2  ;;  %v2011_v2 = vadd.f32 %v4249_v33, %v4157_v7 }
 0x247   : > { %v4287_v53 = vpop.f32.mrf.mxu0  ;;  %v4289_v32 = vpop.f32.mrf.mxu1 }
 0x248   : > { %4617 = vst [vmem:[#allocation24_spill] sm:$0xff] %v4287_v53  ;;  %4618 = vst [vmem:[#allocation25_spill] sm:$0xff] %v4289_v32 }
 0x249   : > { %v2062_v13 = vpop.f32.mrf.mxu0  ;;  %v2287_v49 = vpop.f32.mrf.mxu1 }
 0x24b   : > { %v4292_v9 = vpop.f32.mrf.mxu0  ;;  %v4294_v61 = vpop.f32.mrf.mxu1 }
 0x24d   : > { %v2067_v57 = vpop.f32.mrf.mxu0  ;;  %v2292_v56 = vpop.f32.mrf.mxu1 }
 0x24e   : > { %v2236_v56 = vadd.f32 %v4251_v19, %v2011_v2 }
 0x24f   : > { %v2912_v27 = vpop.f32.mrf.mxu0  ;;  %v2936_v53 = vpop.f32.mrf.mxu1 }
 0x250   : > { %v2366_v32 = vadd.f32 %v2912_v27, %v4198_v59  ;;  %v4299_v13 = vadd.f32 %v2936_v53, %v2221_v46  ;;  %v2231_v59 = vadd.f32 %v4247_v18, %v2006_v8  ;;  %v2016_v46 = vadd.f32 %v2015_v34, %v4161_v15 }
 0x251   : > { %v2360_v49 = vpop.f32.mrf.mxu0  ;;  %v2440_v63 = vpop.f32.mrf.mxu1 }
 0x252   : > { %2520 = vst [vmem:[%s4303_s5 + $0x8] sm:$0xff] %v2366_v32  ;;  %2536 = vst [vmem:[%s4303_s5 + $0x88] sm:$0xff] %v4299_v13  ;;  %v2361_v43 = vadd.f32 %v2360_v49, %v4195_v28  ;;  %v4310_v60 = vadd.f32 %v2440_v63, %v4243_v16  ;;  %v2590_v5 = vmul.f32 %v2366_v32, %v2366_v32 }
 0x253   : > { %v2915_v24 = vpop.f32.mrf.mxu0  ;;  %v2939_v35 = vpop.f32.mrf.mxu1 }
 0x254   : > { %2519 = vst [vmem:[%s4303_s5] sm:$0xff] %v2361_v43  ;;  %v2551_v47 = vadd.f32 %v2366_v32, %v2361_v43  ;;  %v2589_v53 = vmul.f32 %v2361_v43, %v2361_v43  ;;  %2535 = vst [vmem:[%s4303_s5 + $0x80] sm:$0xff] %v4310_v60  ;;  %v2376_v28 = vadd.f32 %v2915_v24, %v4204_v50 }
 0x255   : > { %v4321_v16 = vadd.f32 %v2939_v35, %v2231_v59  ;;  %v2370_v12 = vpop.f32.mrf.mxu0  ;;  %v2450_v15 = vpop.f32.mrf.mxu1  ;;  %v2241_v32 = vadd.f32 %v4253_v22, %v2016_v46  ;;  %v2021_v22 = vadd.f32 %v4255_v37, %v4165_v52  ;;  %v2251_v59 = vadd.f32 %v4261_v44, %v2026_v42 }
 0x256   : > { %v2621_v18 = vadd.f32 %v2590_v5, %v2589_v53  ;;  %2522 = vst [vmem:[%s4303_s5 + $0x18] sm:$0xff] %v2376_v28  ;;  %v2371_v34 = vadd.f32 %v2370_v12, %v4201_v40  ;;  %v4325_v63 = vadd.f32 %v2450_v15, %v2226_v39  ;;  %v2592_v27 = vmul.f32 %v2376_v28, %v2376_v28 }
 0x257   : > { %2538 = vst [vmem:[%s4303_s5 + $0x98] sm:$0xff] %v4321_v16  ;;  %v2918_v7 = vpop.f32.mrf.mxu0  ;;  %v2942_v50 = vpop.f32.mrf.mxu1  ;;  %v2246_v5 = vadd.f32 %v4257_v41, %v2021_v22  ;;  %v2031_v44 = vadd.f32 %v4263_v55, %v4171_v58  ;;  %v2046_v41 = vadd.f32 %v4275_v36, %v4180_v10 }
 0x258   : > { %2521 = vst [vmem:[%s4303_s5 + $0x10] sm:$0xff] %v2371_v34  ;;  %v2552_v33 = vadd.f32 %v2551_v47, %v2371_v34  ;;  %v2591_v57 = vmul.f32 %v2371_v34, %v2371_v34  ;;  %2537 = vst [vmem:[%s4303_s5 + $0x90] sm:$0xff] %v4325_v63  ;;  %v2386_v40 = vadd.f32 %v2918_v7, %v4210_v25 }
 0x259   : > { %v4339_v54 = vadd.f32 %v2942_v50, %v2241_v32  ;;  %v2380_v45 = vpop.f32.mrf.mxu0  ;;  %v2460_v8 = vpop.f32.mrf.mxu1  ;;  %v2036_v25 = vadd.f32 %v4267_v0, %v4174_v29  ;;  %v2256_v42 = vadd.f32 %v4265_v4, %v2031_v44  ;;  %v2056_v4 = vadd.f32 %v4283_v1, %v4186_v51  ;;  %v4622_v44 = vld [vmem:[#allocation22_spill] sm:$0xff] }
 0x25a   : > { %v2622_v49 = vadd.f32 %v2621_v18, %v2591_v57  ;;  %2524 = vst [vmem:[%s4303_s5 + $0x28] sm:$0xff] %v2386_v40  ;;  %v2381_v43 = vadd.f32 %v2380_v45, %v4207_v6  ;;  %v2553_v39 = vadd.f32 %v2552_v33, %v2376_v28  ;;  %v4348_v19 = vadd.f32 %v2460_v8, %v2236_v56 }
 0x25b   : > { %2540 = vst [vmem:[%s4303_s5 + $0xa8] sm:$0xff] %v4339_v54  ;;  %v2921_v52 = vpop.f32.mrf.mxu0  ;;  %v2945_v37 = vpop.f32.mrf.mxu1  ;;  %v2594_v53 = vmul.f32 %v2386_v40, %v2386_v40 }
 0x25c   : > { %2523 = vst [vmem:[%s4303_s5 + $0x20] sm:$0xff] %v2381_v43  ;;  %v2554_v46 = vadd.f32 %v2553_v39, %v2381_v43  ;;  %v2593_v24 = vmul.f32 %v2381_v43, %v2381_v43  ;;  %v2623_v35 = vadd.f32 %v2622_v49, %v2592_v27  ;;  %v2396_v6 = vadd.f32 %v2921_v52, %v4216_v62 }
 0x25d   : > { %2539 = vst [vmem:[%s4303_s5 + $0xa0] sm:$0xff] %v4348_v19  ;;  %v4357_v29 = vadd.f32 %v2945_v37, %v2251_v59  ;;  %v2390_v0 = vpop.f32.mrf.mxu0  ;;  %v2470_v47 = vpop.f32.mrf.mxu1  ;;  %v2261_v62 = vadd.f32 %v4269_v14, %v2036_v25  ;;  %v2041_v14 = vadd.f32 %v4271_v11, %v4177_v31 }
 0x25e   : > { %v2624_v28 = vadd.f32 %v2623_v35, %v2593_v24  ;;  %2526 = vst [vmem:[%s4303_s5 + $0x38] sm:$0xff] %v2396_v6  ;;  %v2391_v2 = vadd.f32 %v2390_v0, %v4213_v17  ;;  %v2555_v12 = vadd.f32 %v2554_v46, %v2386_v40  ;;  %v4366_v58 = vadd.f32 %v2470_v47, %v2246_v5  ;;  %v4621_v5 = vld [vmem:[#allocation20_spill] sm:$0xff] }
 0x25f   : > { %2542 = vst [vmem:[%s4303_s5 + $0xb8] sm:$0xff] %v4357_v29  ;;  %v2924_v55 = vpop.f32.mrf.mxu0  ;;  %v2948_v15 = vpop.f32.mrf.mxu1  ;;  %v2596_v50 = vmul.f32 %v2396_v6, %v2396_v6  ;;  %v2266_v27 = vadd.f32 %v4273_v3, %v2041_v14  ;;  %v4620_v3 = vld [vmem:[#allocation18_spill] sm:$0xff]  ;;  %v4623_v47 = vld [vmem:[#allocation16_spill] sm:$0xff] }
 0x260   : > { %2525 = vst [vmem:[%s4303_s5 + $0x30] sm:$0xff] %v2391_v2  ;;  %v2556_v18 = vadd.f32 %v2555_v12, %v2391_v2  ;;  %v2595_v34 = vmul.f32 %v2391_v2, %v2391_v2  ;;  %v2625_v32 = vadd.f32 %v2624_v28, %v2594_v53  ;;  %v2406_v17 = vadd.f32 %v2924_v55, %v4222_v30  ;;  %v4624_v53 = vld [vmem:[#allocation24_spill] sm:$0xff]  ;;  %v4625_v55 = vld [vmem:[#allocation17_spill] sm:$0xff] }
 0x261   : > { %2541 = vst [vmem:[%s4303_s5 + $0xb0] sm:$0xff] %v4366_v58  ;;  %v4375_v10 = vadd.f32 %v2948_v15, %v2261_v62  ;;  %v2400_v36 = vpop.f32.mrf.mxu0  ;;  %v2480_v7 = vpop.f32.mrf.mxu1  ;;  %v2271_v30 = vadd.f32 %v4277_v38, %v2046_v41  ;;  %v2051_v38 = vadd.f32 %v4279_v48, %v4183_v23  ;;  %v2066_v37 = vadd.f32 %v4292_v9, %v4620_v3 }
 0x262   : > { %v2626_v33 = vadd.f32 %v2625_v32, %v2595_v34  ;;  %2528 = vst [vmem:[%s4303_s5 + $0x48] sm:$0xff] %v2406_v17  ;;  %v2401_v57 = vadd.f32 %v2400_v36, %v4219_v21  ;;  %v2557_v40 = vadd.f32 %v2556_v18, %v2396_v6  ;;  %v4384_v31 = vadd.f32 %v2480_v7, %v2256_v42 }
 0x263   : > { %2544 = vst [vmem:[%s4303_s5 + $0xc8] sm:$0xff] %v4375_v10  ;;  %v2927_v11 = vpop.f32.mrf.mxu0  ;;  %v2951_v56 = vpop.f32.mrf.mxu1  ;;  %v2598_v43 = vmul.f32 %v2406_v17, %v2406_v17  ;;  %v2276_v0 = vadd.f32 %v4622_v44, %v2051_v38  ;;  %v2061_v9 = vadd.f32 %v4624_v53, %v4623_v47  ;;  %v2291_v34 = vadd.f32 %v4294_v61, %v2066_v37 }
 0x264   : > { %2527 = vst [vmem:[%s4303_s5 + $0x40] sm:$0xff] %v2401_v57  ;;  %v2558_v22 = vadd.f32 %v2557_v40, %v2401_v57  ;;  %v2597_v45 = vmul.f32 %v2401_v57, %v2401_v57  ;;  %v2627_v8 = vadd.f32 %v2626_v33, %v2596_v50  ;;  %v2416_v21 = vadd.f32 %v2927_v11, %v4228_v26  ;;  %v4619_v26 = vld [vmem:[#allocation23_spill] sm:$0xff]  ;;  %v4626_v50 = vld [vmem:[#allocation21_spill] sm:$0xff] }
 0x265   : > { %2543 = vst [vmem:[%s4303_s5 + $0xc0] sm:$0xff] %v4384_v31  ;;  %v4393_v51 = vadd.f32 %v2951_v56, %v2271_v30  ;;  %v2410_v1 = vpop.f32.mrf.mxu0  ;;  %v2490_v49 = vpop.f32.mrf.mxu1  ;;  %v2281_v52 = vadd.f32 %v4619_v26, %v2056_v4  ;;  %v4627_v57 = vld [vmem:[#allocation25_spill] sm:$0xff] }
 0x266   : > { %v2628_v39 = vadd.f32 %v2627_v8, %v2597_v45  ;;  %2530 = vst [vmem:[%s4303_s5 + $0x58] sm:$0xff] %v2416_v21  ;;  %v2411_v59 = vadd.f32 %v2410_v1, %v4225_v20  ;;  %v2559_v25 = vadd.f32 %v2558_v22, %v2406_v17  ;;  %v4402_v23 = vadd.f32 %v2490_v49, %v2266_v27  ;;  %v4628_v22 = vld [vmem:[#allocation19_spill] sm:$0xff] }
 0x267   : > { %2546 = vst [vmem:[%s4303_s5 + $0xd8] sm:$0xff] %v4393_v51  ;;  %v2930_v48 = vpop.f32.mrf.mxu0  ;;  %v2954_v46 = vpop.f32.mrf.mxu1  ;;  %v2600_v62 = vmul.f32 %v2416_v21, %v2416_v21  ;;  %v2286_v40 = vadd.f32 %v4627_v57, %v2061_v9 }
 0x268   : > { %2529 = vst [vmem:[%s4303_s5 + $0x50] sm:$0xff] %v2411_v59  ;;  %v2560_v24 = vadd.f32 %v2559_v25, %v2411_v59  ;;  %v2599_v35 = vmul.f32 %v2411_v59, %v2411_v59  ;;  %v2629_v6 = vadd.f32 %v2628_v39, %v2598_v43  ;;  %v2426_v20 = vadd.f32 %v2930_v48, %v4621_v5 }
 0x269   : > { %2545 = vst [vmem:[%s4303_s5 + $0xd0] sm:$0xff] %v4402_v23  ;;  %v4411_v28 = vadd.f32 %v2954_v46, %v2281_v52  ;;  %v2420_v2 = vpop.f32.mrf.mxu0  ;;  %v2500_v12 = vpop.f32.mrf.mxu1 }
 0x26a   : > { %v2630_v41 = vadd.f32 %v2629_v6, %v2599_v35  ;;  %2532 = vst [vmem:[%s4303_s5 + $0x68] sm:$0xff] %v2426_v20  ;;  %v2421_v15 = vadd.f32 %v2420_v2, %v4625_v55  ;;  %v2561_v18 = vadd.f32 %v2560_v24, %v2416_v21  ;;  %v4418_v32 = vadd.f32 %v2500_v12, %v2276_v0 }
 0x26b   : > { %2548 = vst [vmem:[%s4303_s5 + $0xe8] sm:$0xff] %v4411_v28  ;;  %v2933_v17 = vpop.f32.mrf.mxu0  ;;  %v2957_v42 = vpop.f32.mrf.mxu1  ;;  %v2602_v11 = vmul.f32 %v2426_v20, %v2426_v20 }
 0x26c   : > { %2531 = vst [vmem:[%s4303_s5 + $0x60] sm:$0xff] %v2421_v15  ;;  %v2562_v14 = vadd.f32 %v2561_v18, %v2421_v15  ;;  %v2601_v36 = vmul.f32 %v2421_v15, %v2421_v15  ;;  %v2631_v7 = vadd.f32 %v2630_v41, %v2600_v62  ;;  %v2436_v33 = vadd.f32 %v2933_v17, %v4626_v50 }
 0x26d   : > { %2547 = vst [vmem:[%s4303_s5 + $0xe0] sm:$0xff] %v4418_v32  ;;  %v4427_v61 = vadd.f32 %v2957_v42, %v2291_v34  ;;  %v2430_v30 = vpop.f32.mrf.mxu0  ;;  %v2510_v4 = vpop.f32.mrf.mxu1 }
 0x26e   : > { %v2632_v56 = vadd.f32 %v2631_v7, %v2601_v36  ;;  %2534 = vst [vmem:[%s4303_s5 + $0x78] sm:$0xff] %v2436_v33  ;;  %v2431_v45 = vadd.f32 %v2430_v30, %v4628_v22  ;;  %v2563_v8 = vadd.f32 %v2562_v14, %v2426_v20  ;;  %v4440_v21 = vadd.f32 %v2510_v4, %v2286_v40 }
 0x26f   : > { %2550 = vst [vmem:[%s4303_s5 + $0xf8] sm:$0xff] %v4427_v61  ;;  %v2604_v49 = vmul.f32 %v2436_v33, %v2436_v33 }
 0x270   : > { %2533 = vst [vmem:[%s4303_s5 + $0x70] sm:$0xff] %v2431_v45  ;;  %v2564_v27 = vadd.f32 %v2563_v8, %v2431_v45  ;;  %v2603_v38 = vmul.f32 %v2431_v45, %v2431_v45  ;;  %v2633_v1 = vadd.f32 %v2632_v56, %v2602_v11  ;;  %2549 = vst [vmem:[%s4303_s5 + $0xf0] sm:$0xff] %v4440_v21 }
 0x272   : > { %v2565_v43 = vadd.f32 %v2564_v27, %v2436_v33  ;;  %v2634_v39 = vadd.f32 %v2633_v1, %v2603_v38 }
 0x273   : > { %3154 = shalt.err (!%p3151_p0)
}
 0x274   : > { %s3155_s8 = scalar_lea.hbm %s4434_s13, 4096  ;;  %s3159_s21 = scalar_lea.hbm %s4555_s3, 8192 }
 0x275   : > { %p3156_p5 = scmp.ne.s32.totalorder %s4434_s13, %s3155_s8  ;;  %p3160_p4 = scmp.lt.s32.totalorder %s4434_s13, %s4555_s3 }
 0x276   : > { %p3161_p6 = scmp.lt.s32.totalorder %s3159_s21, %s3155_s8 }
 0x277   : > { %p3157_p2 = pnand %p3156_p5, %p4629_p11 }
 0x278   : > { %p3162_p8 = por %p3161_p6, %p3160_p4 }
 0x279   : > { %p3158_p1 = pneg %p3157_p2 }
 0x27b   : > { %p3163_p3 = pnand %p3162_p8, %p3158_p1 }
 0x27d   : > { %3166 = shalt.err (!%p3163_p3)
}
 0x27e   : > { %s3247_s6 = smov 128   ;;  %s3248_s26 = smov 8   ;;  %v2605_v59 = vmul.f32 %v4310_v60, %v4310_v60  ;;  %v2566_v25 = vadd.f32 %v2565_v43, %v4310_v60  ;;  %v2635_v26 = vadd.f32 %v2634_v39, %v2604_v49  ;;  %v2606_v52 = vmul.f32 %v4299_v13, %v4299_v13 }
 0x27f   : > { %2996 = dma.vmem_to_hbm [thread:$0]  (%p4629_p11), %s4436_s24, 4096, %s4434_s13, %s2662_s14, %s3247_s6, %s3247_s6, %s3248_s26   ;;  %v2607_v48 = vmul.f32 %v4325_v63, %v4325_v63  ;;  %v2608_v35 = vmul.f32 %v4321_v16, %v4321_v16  ;;  %v2609_v60 = vmul.f32 %v4348_v19, %v4348_v19  ;;  %v2618_v36 = vmul.f32 %v4411_v28, %v4411_v28 }
 0x280   : > { %v2567_v3 = vadd.f32 %v2566_v25, %v4299_v13  ;;  %v2636_v37 = vadd.f32 %v2635_v26, %v2605_v59  ;;  %v2610_v13 = vmul.f32 %v4339_v54, %v4339_v54  ;;  %v2619_v33 = vmul.f32 %v4440_v21, %v4440_v21  ;;  %s2819_s24 = sshll.u32 %s3397_s30, 1  ;;  %s2825_s29 = sshll.u32 %s3296_s19, 5 }
 0x281   : > { %v2620_v57 = vmul.f32 %v4427_v61, %v4427_v61  ;;  %s241_s13 = scalar_lea.vmem [#allocation10], %s2819_s24  ;;  %s2694_s25 = scalar_lea.hbm %s4556_s4, %s2825_s29 }
 0x282   : > { %v2568_v46 = vadd.f32 %v2567_v3, %v4325_v63  ;;  %v2637_v24 = vadd.f32 %v2636_v37, %v2606_v52  ;;  %v2611_v63 = vmul.f32 %v4366_v58, %v4366_v58  ;;  %s2696_s14 = sshll.u32 %s241_s13, 4  ;;  %s2667_s7 = scalar_lea.sflag [#allocation11], %s3397_s30  ;;  %s2697_s14 = int_to_ptr.vmem [resolvable:$true] %s2696_s14 }
 0x283   : > { %s3167_s8 = scalar_lea.vmem %s2697_s14, 32  ;;  %s3249_s12 = smov [#allocation10]  }
 0x284   : > { %v2569_v6 = vadd.f32 %v2568_v46, %v4321_v16  ;;  %v2638_v5 = vadd.f32 %v2637_v24, %v2607_v48  ;;  %v2612_v16 = vmul.f32 %v4357_v29, %v4357_v29  ;;  %p3168_p7 = scmp.ne.s32.totalorder %s2697_s14, %s3167_s8  ;;  %s3171_s19 = sshll.u32 %s3249_s12, 4  ;;  %s3172_s19 = int_to_ptr.vmem [resolvable:$false] %s3171_s19 }
 0x285   : > { %s3173_s28 = scalar_lea.vmem %s3172_s19, 64  ;;  %p3174_p12 = scmp.lt.s32.totalorder %s2697_s14, %s3172_s19 }
 0x286   : > { %v2570_v20 = vadd.f32 %v2569_v6, %v4348_v19  ;;  %v2639_v44 = vadd.f32 %v2638_v5, %v2608_v35  ;;  %v2613_v19 = vmul.f32 %v4384_v31, %v4384_v31  ;;  %p3169_p9 = pnand %p3168_p7, %p4629_p11  ;;  %p3175_p13 = scmp.lt.s32.totalorder %s3173_s28, %s3167_s8 }
 0x288   : > { %v2571_v0 = vadd.f32 %v2570_v20, %v4339_v54  ;;  %v2640_v47 = vadd.f32 %v2639_v44, %v2609_v60  ;;  %v2614_v54 = vmul.f32 %v4375_v10, %v4375_v10  ;;  %p3170_p10 = pneg %p3169_p9  ;;  %p3176_p0 = por %p3175_p13, %p3174_p12 }
 0x28a   : > { %v2641_v53 = vadd.f32 %v2640_v47, %v2610_v13  ;;  %v2572_v9 = vadd.f32 %v2571_v0, %v4366_v58  ;;  %v2615_v58 = vmul.f32 %v4402_v23, %v4402_v23  ;;  %p3177_p5 = pnand %p3176_p0, %p3170_p10 }
 0x28c   : > { %v2573_v2 = vadd.f32 %v2572_v9, %v4357_v29  ;;  %v2642_v12 = vadd.f32 %v2641_v53, %v2611_v63  ;;  %v2616_v29 = vmul.f32 %v4393_v51, %v4393_v51 }
 0x28e   : > { %v2574_v62 = vadd.f32 %v2573_v2, %v4384_v31  ;;  %v2643_v41 = vadd.f32 %v2642_v12, %v2612_v16  ;;  %v2617_v31 = vmul.f32 %v4418_v32, %v4418_v32 }
 0x290   : > { %v2575_v55 = vadd.f32 %v2574_v62, %v4375_v10  ;;  %v2644_v15 = vadd.f32 %v2643_v41, %v2613_v19 }
 0x292   : > { %v2576_v18 = vadd.f32 %v2575_v55, %v4402_v23  ;;  %v2645_v34 = vadd.f32 %v2644_v15, %v2614_v54 }
 0x294   : > { %v2577_v17 = vadd.f32 %v2576_v18, %v4393_v51  ;;  %v2646_v42 = vadd.f32 %v2645_v34, %v2615_v58 }
 0x296   : > { %v2578_v14 = vadd.f32 %v2577_v17, %v4418_v32  ;;  %v2647_v10 = vadd.f32 %v2646_v42, %v2616_v29 }
 0x298   : > { %v2579_v7 = vadd.f32 %v2578_v14, %v4411_v28  ;;  %v2648_v23 = vadd.f32 %v2647_v10, %v2617_v31 }
 0x29a   : > { %v2580_v50 = vadd.f32 %v2579_v7, %v4440_v21  ;;  %v2649_v51 = vadd.f32 %v2648_v23, %v2618_v36 }
 0x29c   : > { %v2581_v40 = vadd.f32 %v2580_v50, %v4427_v61  ;;  %v2650_v32 = vadd.f32 %v2649_v51, %v2619_v33 }
 0x29e   : > { %v2582_v30 = vrot.slane %v2581_v40, 4  ;;  %v2651_v4 = vadd.f32 %v2650_v32, %v2620_v57 }
 0x2a0   : > { %v2583_v11 = vadd.f32 %v2582_v30, %v2581_v40  ;;  %v2652_v56 = vrot.slane %v2651_v4, 4 }
 0x2a2   : > { %v2584_v28 = vrot.slane %v2583_v11, 2  ;;  %v2653_v22 = vadd.f32 %v2652_v56, %v2651_v4 }
 0x2a4   : > { %v2585_v45 = vadd.f32 %v2584_v28, %v2583_v11  ;;  %v2654_v8 = vrot.slane %v2653_v22, 2 }
 0x2a6   : > { %v2586_v21 = vrot.slane %v2585_v45, 1  ;;  %v2655_v27 = vadd.f32 %v2654_v8, %v2653_v22 }
 0x2a8   : > { %v2587_v38 = vadd.f32 %v2586_v21, %v2585_v45  ;;  %v2656_v1 = vrot.slane %v2655_v27, 1 }
 0x2aa   : > { %v2657_v61 = vadd.f32 %v2656_v1, %v2655_v27  ;;  %2659 = vst [vmem:[%s241_s13] sm:$0x1] %v2587_v38 }
 0x2ac   : > { %2660 = vst [vmem:[%s241_s13 + $0x1] sm:$0x1] %v2657_v61 }
 0x2ad   : > { %3180 = shalt.err (!%p3177_p5)
}
 0x2ae   : > { %s3181_s21 = scalar_lea.hbm %s2694_s25, 32  ;;  %s3185_s5 = scalar_lea.hbm %s4556_s4, 64 }
 0x2af   : > { %p3182_p2 = scmp.ne.s32.totalorder %s2694_s25, %s3181_s21  ;;  %p3186_p6 = scmp.lt.s32.totalorder %s2694_s25, %s4556_s4 }
 0x2b0   : > { %p3187_p8 = scmp.lt.s32.totalorder %s3185_s5, %s3181_s21 }
 0x2b1   : > { %p3183_p1 = pnand %p3182_p2, %p4629_p11 }
 0x2b2   : > { %p3188_p3 = por %p3187_p8, %p3186_p6 }
 0x2b3   : > { %p3184_p4 = pneg %p3183_p1 }
 0x2b5   : > { %p3189_p7 = pnand %p3188_p3, %p3184_p4 }
 0x2b7   : > { %3192 = shalt.err (!%p3189_p7)
}
 0x2b8   : > { %2997 = dma.vmem_to_hbm [thread:$0]  (%p4629_p11), %s2697_s14, 32, %s2694_s25, %s2667_s7  }
 0x2b9 PF: > { %s2708_s24 = sand.u32 1, %s3227_s15   ;;  %p4630_p9 = scmp.ne.s32.totalorder %s4578_s22, 0 }
 0x2ba   : > { %p4631_p10 = scmp.ge.s32.totalorder %s3239_s18, 2  ;;  %s2709_s29 = scalar_lea.sflag [#allocation6], %s2708_s24 }
 0x2bc   : > { %p3009_p12 = pnand %p4631_p10, %p4630_p9 }
 0x2be   : > { %p3010_p13 = pneg %p3009_p12 }
 0x2c0   : > { %3218 = dma.done.wait (%p3010_p13), %s2709_s29, 4096  }
 0x2c1   : > { %3220 = vsyncadd (%p3010_p13), %s2709_s29, 4294963200  ;;  %s2718_s13 = scalar_lea.sflag [#allocation11], %s2708_s24 }
 0x2c2   : > { %3222 = dma.done.wait (%p3010_p13), %s2718_s13, 32  }
 0x2c3   : > { %3224 = vsyncadd (%p3010_p13), %s2718_s13, 4294967264  ;;  %p22_p11 = scmp.ge.s32.totalorder %s3329_s27, 4   ;;  %s4632_s15 = smov %s3231_s16 }
 0x2c4   : > { %s4633_s16 = smov %s3235_s17  ;;  %s4634_s17 = smov %s3349_s9 }
 0x2c5   : > { %s4635_s18 = smov %s3329_s27  ;;  %24 = sbr.rel (!%p22_p11) target bundleno = 8 (0x8), region = 101 }
 0x2ca   :  { %2723 = vsyncpa [#allocation5], 1 }
 0x2cb   :  { %2725 = vsyncpa [#allocation5 + $0x1], 1 }
 0x2cc   :  { %2726 = vsyncpa [#allocation8], 1 }
 0x2cd   :  { %2727 = vsyncpa [#allocation6], 1 }
 0x2ce   :  { %2729 = vsyncpa [#allocation6 + $0x1], 1 }
 0x2cf   :  { %2730 = vsyncpa [#allocation11], 1 }
 0x2d0   :  { %2732 = vsyncpa [#allocation11 + $0x1], 1 }

</bundles_post_ra>
